<compile_context>
chip_gen: v7x
topology: tpu7x:2x2x1
jax: 0.10.0
libtpu: 0.0.40
codegen_flags: <defaults>
</compile_context>

<pallas_src>
import functools

import jax
import jax.numpy as jnp
from jax import lax
from jax.experimental import pallas as pl
from jax.experimental.pallas import tpu as pltpu

LANE = 128     # channel (lane) padding granularity
SUBLANE = 8    # W (sublane) padding granularity


def _round_up(x, m):
    return (x + m - 1) // m * m


def _largest_divisor_leq(n, k):
    k = max(1, min(n, k))
    while n % k:
        k -= 1
    return k


def _vmem_capacity_bytes():
    """Per-core VMEM capacity; falls back to a v7x-safe 64 MiB."""
    try:
        cap = getattr(pltpu.get_tpu_info(), "vmem_capacity_bytes", None)
        if cap:
            return int(cap)
    except Exception:
        pass
    return 64 * 1024 * 1024


def _pick_tiles(N, H, W, cin_p, cout_p, cout, itemsize, budget):
    """Pick (batch tile TN, row tile TH) so one grid step fits `budget` bytes.

    Returns (TN, TH, footprint_bytes). Bytes per image row of one grid step:
      2x dbl-buffered input block + 2x dbl-buffered (unpadded) output block +
      in-kernel temporaries (x_ext/x_lft/x_rgt/acc in the source dtype, f32
      matmul result). Halo blocks and weights are counted separately.
    """
    row_bytes = W * (2 * cin_p * itemsize + 2 * cout * itemsize
                     + 4 * cin_p * itemsize + 4 * cout_p)
    halo_bytes = 4 * W * cin_p * itemsize                     # 2 halos, dbl-buffered
    weight_bytes = 2 * (9 * cin_p + cin_p * cout_p) * itemsize

    avail = max(budget - weight_bytes, row_bytes)
    th = _largest_divisor_leq(H, max(1, (avail - halo_bytes) // row_bytes))

    tn = 1
    if th == H and N > 1:
        per_image = H * row_bytes + halo_bytes
        tn = _largest_divisor_leq(N, max(1, avail // per_image))

    # Keep at least 2 grid steps so a v7x megacore can split the work.
    if (N // tn) * (H // th) < 2:
        if N > 1:
            tn = _largest_divisor_leq(N, N // 2)
        elif H > 1:
            th = _largest_divisor_leq(H, H // 2)

    footprint = tn * (th * row_bytes + halo_bytes) + weight_bytes
    return tn, th, footprint


def _dwsep_kernel(x_mid_ref, x_top_ref, x_bot_ref, wdw_ref, wpw_ref, out_ref,
                  *, TH, W, nH, cout, mxu_dtype):
    """One (TN, TH) row-tile: depthwise(3x3, pad=1) followed by pointwise(1x1)."""
    i = pl.program_id(1)
    cdt = x_mid_ref.dtype                   # depthwise path stays in source dtype

    x_mid = x_mid_ref[...]                                      # (TN, TH, W, C)

    # 1-row halos (clamped index_map); zero them at the image edges so the
    # boundary behaves like `padding=1`.
    top_ok = (i > 0).astype(cdt)
    bot_ok = (i < nH - 1).astype(cdt)
    x_top = x_top_ref[...] * top_ok                             # (TN, 1, W, C)
    x_bot = x_bot_ref[...] * bot_ok                             # (TN, 1, W, C)
    x_ext = jnp.concatenate([x_top, x_mid, x_bot], axis=1)      # (TN, TH+2, W, C)

    # +-1 column shifts via XLU rotation (no full-tile concat copies); the
    # wrapped-around edge column is zeroed with a small (1, 1, W, C) mask.
    c = x_ext.shape[-1]
    col = lax.broadcasted_iota(jnp.int32, (1, 1, W, c), 2)
    not_first = (col > 0).astype(cdt)                           # zero at w == 0
    not_last = (col < W - 1).astype(cdt)                        # zero at w == W-1
    x_lft = pltpu.roll(x_ext, 1, 2) * not_first                 # value at w-1
    x_rgt = pltpu.roll(x_ext, W - 1, 2) * not_last              # value at w+1
    xs = (x_lft, x_ext, x_rgt)                                  # indexed by dj

    # Depthwise 3x3: 9 shifted FMAs on the VPU, channels lane-dense, source
    # dtype (bf16 taps on v6e/v7x; exact f32 for f32 inputs).
    wdw = wdw_ref[...]                                          # (3, 3, C)
    acc = jnp.zeros(x_mid.shape, cdt)
    for di in range(3):
        for dj in range(3):
            acc = acc + xs[dj][:, di:di + TH] * wdw[di, dj]

    # Pointwise 1x1: one MXU matmul over the lane-padded channel axis.
    # W % 8 == 0 is enforced by the wrapper, so this reshape is a free view.
    tn = x_mid.shape[0]
    y = jnp.dot(acc.reshape(tn * TH * W, c).astype(mxu_dtype),
                wpw_ref[...].astype(mxu_dtype),
                preferred_element_type=jnp.float32)             # (rows, cout_p)
    y = y.reshape(tn, TH, W, -1)
    # Store only the real Cout lanes (masked store) -> no padded HBM writeback.
    out_ref[...] = y[..., :cout].astype(out_ref.dtype)


def dwsep_conv_nhwc(x, wdw, wpw, cout, *, pointwise_bf16=False,
                    vmem_fraction=0.45):
    """Core kernel on NHWC data.

    x:   (N, H, W, cin_p)  with W % 8 == 0 and cin_p % 128 == 0
    wdw: (3, 3, cin_p)     depthwise taps
    wpw: (cin_p, cout_p)   pointwise weight, cout_p % 128 == 0
    Returns (N, H, W, cout) in x.dtype.
    """
    N, H, W, cin_p = x.shape
    cout_p = wpw.shape[1]
    dtype = x.dtype
    itemsize = jnp.dtype(dtype).itemsize
    assert W % SUBLANE == 0 and cin_p % LANE == 0 and cout_p % LANE == 0

    cap = _vmem_capacity_bytes()
    budget = int(cap * vmem_fraction)
    TN, TH, footprint = _pick_tiles(N, H, W, cin_p, cout_p, cout, itemsize, budget)
    nB, nH = N // TN, H // TH

    # Derive the VMEM limit from the actual footprint (never below the
    # compiler's 32 MiB default, never above ~90% of physical capacity).
    vmem_limit = min(int(cap * 0.9),
                     max(32 * 1024 * 1024, footprint + footprint // 2 + (4 << 20)))

    # bf16 inputs (or explicit opt-in, e.g. for v5e f32 configs) feed the MXU
    # in bf16; otherwise keep the pointwise matmul in f32.
    mxu_dtype = jnp.bfloat16 if (dtype == jnp.bfloat16 or pointwise_bf16) else jnp.float32

    kernel = functools.partial(_dwsep_kernel, TH=TH, W=W, nH=nH, cout=cout,
                               mxu_dtype=mxu_dtype)

    return pl.pallas_call(
        kernel,
        out_shape=jax.ShapeDtypeStruct((N, H, W, cout), dtype),
        grid_spec=pltpu.PrefetchScalarGridSpec(
            num_scalar_prefetch=0,
            grid=(nB, nH),
            in_specs=[
                # Current row tile.
                pl.BlockSpec((TN, TH, W, cin_p), lambda b, i: (b, i, 0, 0)),
                # 1-row halos above/below (clamped at edges; masked in-kernel).
                pl.BlockSpec((TN, 1, W, cin_p),
                             lambda b, i: (b, jnp.maximum(i * TH - 1, 0), 0, 0)),
                pl.BlockSpec((TN, 1, W, cin_p),
                             lambda b, i: (b, jnp.minimum(i * TH + TH, H - 1), 0, 0)),
                pl.BlockSpec((3, 3, cin_p), lambda b, i: (0, 0, 0)),
                pl.BlockSpec((cin_p, cout_p), lambda b, i: (0, 0)),
            ],
            out_specs=pl.BlockSpec((TN, TH, W, cout), lambda b, i: (b, i, 0, 0)),
        ),
        compiler_params=pltpu.CompilerParams(
            dimension_semantics=("parallel", "parallel"),
            vmem_limit_bytes=vmem_limit,
        ),
    )(x, x, x, wdw, wpw)


def depthwise_separable_conv(x_nchw, w_dw, w_pw, **kwargs):
    """x_nchw: (N, Cin, H, W); w_dw: (Cin, 1, 3, 3); w_pw: (Cout, Cin, 1, 1).
    Returns (N, Cout, H, W) -- same semantics as the PyTorch module.

    NOTE: models that are NHWC end-to-end should call dwsep_conv_nhwc directly
    and drop these two boundary transposes (each is a full HBM round trip).
    """
    N, Cin, H, W = x_nchw.shape
    Cout = w_pw.shape[0]
    dtype = x_nchw.dtype
    cin_p = _round_up(Cin, LANE)
    cout_p = _round_up(Cout, LANE)
    W_pad = _round_up(W, SUBLANE)

    # NCHW -> NHWC; pad W to a multiple of 8 and channels to a multiple of 128
    # (zero pad: the extra W columns act exactly like the padding=1 border and
    # are sliced off below).
    x = jnp.transpose(x_nchw, (0, 2, 3, 1))
    x = jnp.pad(x, ((0, 0), (0, 0), (0, W_pad - W), (0, cin_p - Cin)))

    wdw = jnp.transpose(w_dw[:, 0, :, :], (1, 2, 0))               # (3, 3, Cin)
    wdw = jnp.pad(wdw, ((0, 0), (0, 0), (0, cin_p - Cin))).astype(dtype)
    wpw = jnp.transpose(w_pw[:, :, 0, 0], (1, 0))                  # (Cin, Cout)
    wpw = jnp.pad(wpw, ((0, cin_p - Cin), (0, cout_p - Cout))).astype(dtype)

    out = dwsep_conv_nhwc(x, wdw, wpw, Cout, **kwargs)             # (N, H, W_pad, Cout)
    out = out[:, :, :W, :]
    return jnp.transpose(out, (0, 3, 1, 2))


def _reference(x_nchw, w_dw, w_pw):
    # Pure-JAX reference (same math, no Pallas) for a correctness check.
    N, Cin, H, W = x_nchw.shape
    xp = jnp.pad(x_nchw.astype(jnp.float32), ((0, 0), (0, 0), (1, 1), (1, 1)))
    dw = jnp.zeros((N, Cin, H, W), jnp.float32)
    for di in range(3):
        for dj in range(3):
            dw = dw + xp[:, :, di:di + H, dj:dj + W] * \
                 w_dw[:, 0, di, dj].astype(jnp.float32)[None, :, None, None]
    return jnp.einsum('nchw,oc->nohw', dw, w_pw[:, :, 0, 0].astype(jnp.float32),
                      precision=lax.Precision.HIGHEST)


if __name__ == "__main__":
    key = jax.random.PRNGKey(0)
    k_x, k_dw, k_pw = jax.random.split(key, 3)

    N, Cin, Cout, H, W = 2, 4, 8, 16, 16
    x = jax.random.normal(k_x, (N, Cin, H, W), dtype=jnp.float32)
    # Deterministic synthetic parameters matching nn.Conv2d weight shapes:
    w_dw = jax.random.normal(k_dw, (Cin, 1, 3, 3), dtype=jnp.float32) * 0.1
    w_pw = jax.random.normal(k_pw, (Cout, Cin, 1, 1), dtype=jnp.float32) * 0.1

    out = jax.jit(depthwise_separable_conv)(x, w_dw, w_pw)
    out = jax.block_until_ready(out)

    ref = _reference(x, w_dw, w_pw)
    assert out.shape == (N, Cout, H, W), out.shape
    # Tolerance accommodates the MXU's f32 matmul precision (documented in the
    # perf review); a genuine bug (e.g. wrong shift/halo) would be >> 1e-2.
    assert jnp.allclose(out, ref, atol=2e-3, rtol=2e-3), \
        float(jnp.max(jnp.abs(out - ref)))

    print("KERNEL_OK")
</pallas_src>

<mosaic_0001>
module attributes {stable_mosaic.version = 11 : i64} {
  func.func @_dwsep_kernel(%arg0: i32, %arg1: i32, %arg2: memref<1x16x16x128xf32, #tpu.memory_space<vmem>>, %arg3: memref<1x1x16x128xf32, #tpu.memory_space<vmem>>, %arg4: memref<1x1x16x128xf32, #tpu.memory_space<vmem>>, %arg5: memref<3x3x128xf32, #tpu.memory_space<vmem>>, %arg6: memref<128x128xf32, #tpu.memory_space<vmem>>, %arg7: memref<1x16x16x8xf32, #tpu.memory_space<vmem>>) attributes {dimension_semantics = [#tpu.dimension_semantics<parallel>, #tpu.dimension_semantics<parallel>], iteration_bounds = array<i64: 2, 1>, scalar_prefetch = 0 : i64, scratch_operands = 0 : i64, tpu.core_type = #tpu.core_type<tc>, window_params = [{transform_indices = @transform_0, window_bounds = array<i64: 1, 16, 16, 128>}, {transform_indices = @transform_1, window_bounds = array<i64: 1, 1, 16, 128>}, {transform_indices = @transform_2, window_bounds = array<i64: 1, 1, 16, 128>}, {pipeline_mode = #tpu.pipeline_mode<synchronous>, transform_indices = @transform_3, window_bounds = array<i64: 3, 3, 128>}, {pipeline_mode = #tpu.pipeline_mode<synchronous>, transform_indices = @transform_4, window_bounds = array<i64: 128, 128>}, {transform_indices = @transform_5, window_bounds = array<i64: 1, 16, 16, 8>}]} {
    %c0 = arith.constant 0 : index
    %c0_0 = arith.constant 0 : index
    %c0_1 = arith.constant 0 : index
    %c0_2 = arith.constant 0 : index
    %0 = vector.load %arg2[%c0, %c0_0, %c0_1, %c0_2] : memref<1x16x16x128xf32, #tpu.memory_space<vmem>>, vector<1x16x16x128xf32>
    %c0_i32 = arith.constant 0 : i32
    %1 = arith.cmpi sgt, %arg1, %c0_i32 : i32
    %2 = arith.extui %1 : i1 to i32
    %3 = arith.sitofp %2 : i32 to f32
    %c0_i32_3 = arith.constant 0 : i32
    %4 = arith.cmpi slt, %arg1, %c0_i32_3 : i32
    %5 = arith.extui %4 : i1 to i32
    %6 = arith.sitofp %5 : i32 to f32
    %c0_4 = arith.constant 0 : index
    %c0_5 = arith.constant 0 : index
    %c0_6 = arith.constant 0 : index
    %c0_7 = arith.constant 0 : index
    %7 = vector.load %arg3[%c0_4, %c0_5, %c0_6, %c0_7] : memref<1x1x16x128xf32, #tpu.memory_space<vmem>>, vector<1x1x16x128xf32>
    %8 = vector.broadcast %3 : f32 to vector<1x1x16x128xf32>
    %9 = arith.mulf %7, %8 : vector<1x1x16x128xf32>
    %c0_8 = arith.constant 0 : index
    %c0_9 = arith.constant 0 : index
    %c0_10 = arith.constant 0 : index
    %c0_11 = arith.constant 0 : index
    %10 = vector.load %arg4[%c0_8, %c0_9, %c0_10, %c0_11] : memref<1x1x16x128xf32, #tpu.memory_space<vmem>>, vector<1x1x16x128xf32>
    %11 = vector.broadcast %6 : f32 to vector<1x1x16x128xf32>
    %12 = arith.mulf %10, %11 : vector<1x1x16x128xf32>
    %13 = tpu.concatenate %9, %0, %12 in 1 : vector<1x1x16x128xf32>, vector<1x16x16x128xf32>, vector<1x1x16x128xf32> -> vector<1x18x16x128xf32>
    %14 = tpu.iota {dimensions = array<i32: 2>} : vector<1x1x16x128xi32>
    %c0_i32_12 = arith.constant 0 : i32
    %15 = vector.broadcast %c0_i32_12 : i32 to vector<1x1x16x128xi32>
    %16 = arith.cmpi sgt, %14, %15 : vector<1x1x16x128xi32>
    %17 = arith.extui %16 : vector<1x1x16x128xi1> to vector<1x1x16x128xi32>
    %18 = arith.sitofp %17 : vector<1x1x16x128xi32> to vector<1x1x16x128xf32>
    %c15_i32 = arith.constant 15 : i32
    %19 = vector.broadcast %c15_i32 : i32 to vector<1x1x16x128xi32>
    %20 = arith.cmpi slt, %14, %19 : vector<1x1x16x128xi32>
    %21 = arith.extui %20 : vector<1x1x16x128xi1> to vector<1x1x16x128xi32>
    %22 = arith.sitofp %21 : vector<1x1x16x128xi32> to vector<1x1x16x128xf32>
    %c1_i32 = arith.constant 1 : i32
    %23 = tpu.dynamic_rotate %13 by %c1_i32 dim 2 : vector<1x18x16x128xf32>, i32 -> vector<1x18x16x128xf32>
    %24 = vector.broadcast %18 : vector<1x1x16x128xf32> to vector<1x18x16x128xf32>
    %25 = arith.mulf %23, %24 : vector<1x18x16x128xf32>
    %c15_i32_13 = arith.constant 15 : i32
    %26 = tpu.dynamic_rotate %13 by %c15_i32_13 dim 2 : vector<1x18x16x128xf32>, i32 -> vector<1x18x16x128xf32>
    %27 = vector.broadcast %22 : vector<1x1x16x128xf32> to vector<1x18x16x128xf32>
    %28 = arith.mulf %26, %27 : vector<1x18x16x128xf32>
    %c0_14 = arith.constant 0 : index
    %c0_15 = arith.constant 0 : index
    %c0_16 = arith.constant 0 : index
    %29 = vector.load %arg5[%c0_14, %c0_15, %c0_16] : memref<3x3x128xf32, #tpu.memory_space<vmem>>, vector<3x3x128xf32>
    %cst = arith.constant 0.000000e+00 : f32
    %30 = vector.broadcast %cst : f32 to vector<1x16x16x128xf32>
    %31 = vector.extract_strided_slice %25 {offsets = [0, 0, 0, 0], sizes = [1, 16, 16, 128], strides = [1, 1, 1, 1]} : vector<1x18x16x128xf32> to vector<1x16x16x128xf32>
    %32 = vector.extract_strided_slice %29 {offsets = [0, 0, 0], sizes = [1, 1, 128], strides = [1, 1, 1]} : vector<3x3x128xf32> to vector<1x1x128xf32>
    %33 = vector.shape_cast %32 : vector<1x1x128xf32> to vector<128xf32>
    %34 = vector.shape_cast %33 : vector<128xf32> to vector<1x1x1x128xf32>
    %35 = vector.broadcast %34 : vector<1x1x1x128xf32> to vector<1x16x16x128xf32>
    %36 = arith.mulf %31, %35 : vector<1x16x16x128xf32>
    %37 = arith.addf %30, %36 : vector<1x16x16x128xf32>
    %38 = vector.extract_strided_slice %13 {offsets = [0, 0, 0, 0], sizes = [1, 16, 16, 128], strides = [1, 1, 1, 1]} : vector<1x18x16x128xf32> to vector<1x16x16x128xf32>
    %39 = vector.extract_strided_slice %29 {offsets = [0, 1, 0], sizes = [1, 1, 128], strides = [1, 1, 1]} : vector<3x3x128xf32> to vector<1x1x128xf32>
    %40 = vector.shape_cast %39 : vector<1x1x128xf32> to vector<128xf32>
    %41 = vector.shape_cast %40 : vector<128xf32> to vector<1x1x1x128xf32>
    %42 = vector.broadcast %41 : vector<1x1x1x128xf32> to vector<1x16x16x128xf32>
    %43 = arith.mulf %38, %42 : vector<1x16x16x128xf32>
    %44 = arith.addf %37, %43 : vector<1x16x16x128xf32>
    %45 = vector.extract_strided_slice %28 {offsets = [0, 0, 0, 0], sizes = [1, 16, 16, 128], strides = [1, 1, 1, 1]} : vector<1x18x16x128xf32> to vector<1x16x16x128xf32>
    %46 = vector.extract_strided_slice %29 {offsets = [0, 2, 0], sizes = [1, 1, 128], strides = [1, 1, 1]} : vector<3x3x128xf32> to vector<1x1x128xf32>
    %47 = vector.shape_cast %46 : vector<1x1x128xf32> to vector<128xf32>
    %48 = vector.shape_cast %47 : vector<128xf32> to vector<1x1x1x128xf32>
    %49 = vector.broadcast %48 : vector<1x1x1x128xf32> to vector<1x16x16x128xf32>
    %50 = arith.mulf %45, %49 : vector<1x16x16x128xf32>
    %51 = arith.addf %44, %50 : vector<1x16x16x128xf32>
    %52 = vector.extract_strided_slice %25 {offsets = [0, 1, 0, 0], sizes = [1, 16, 16, 128], strides = [1, 1, 1, 1]} : vector<1x18x16x128xf32> to vector<1x16x16x128xf32>
    %53 = vector.extract_strided_slice %29 {offsets = [1, 0, 0], sizes = [1, 1, 128], strides = [1, 1, 1]} : vector<3x3x128xf32> to vector<1x1x128xf32>
    %54 = vector.shape_cast %53 : vector<1x1x128xf32> to vector<128xf32>
    %55 = vector.shape_cast %54 : vector<128xf32> to vector<1x1x1x128xf32>
    %56 = vector.broadcast %55 : vector<1x1x1x128xf32> to vector<1x16x16x128xf32>
    %57 = arith.mulf %52, %56 : vector<1x16x16x128xf32>
    %58 = arith.addf %51, %57 : vector<1x16x16x128xf32>
    %59 = vector.extract_strided_slice %13 {offsets = [0, 1, 0, 0], sizes = [1, 16, 16, 128], strides = [1, 1, 1, 1]} : vector<1x18x16x128xf32> to vector<1x16x16x128xf32>
    %60 = vector.extract_strided_slice %29 {offsets = [1, 1, 0], sizes = [1, 1, 128], strides = [1, 1, 1]} : vector<3x3x128xf32> to vector<1x1x128xf32>
    %61 = vector.shape_cast %60 : vector<1x1x128xf32> to vector<128xf32>
    %62 = vector.shape_cast %61 : vector<128xf32> to vector<1x1x1x128xf32>
    %63 = vector.broadcast %62 : vector<1x1x1x128xf32> to vector<1x16x16x128xf32>
    %64 = arith.mulf %59, %63 : vector<1x16x16x128xf32>
    %65 = arith.addf %58, %64 : vector<1x16x16x128xf32>
    %66 = vector.extract_strided_slice %28 {offsets = [0, 1, 0, 0], sizes = [1, 16, 16, 128], strides = [1, 1, 1, 1]} : vector<1x18x16x128xf32> to vector<1x16x16x128xf32>
    %67 = vector.extract_strided_slice %29 {offsets = [1, 2, 0], sizes = [1, 1, 128], strides = [1, 1, 1]} : vector<3x3x128xf32> to vector<1x1x128xf32>
    %68 = vector.shape_cast %67 : vector<1x1x128xf32> to vector<128xf32>
    %69 = vector.shape_cast %68 : vector<128xf32> to vector<1x1x1x128xf32>
    %70 = vector.broadcast %69 : vector<1x1x1x128xf32> to vector<1x16x16x128xf32>
    %71 = arith.mulf %66, %70 : vector<1x16x16x128xf32>
    %72 = arith.addf %65, %71 : vector<1x16x16x128xf32>
    %73 = vector.extract_strided_slice %25 {offsets = [0, 2, 0, 0], sizes = [1, 16, 16, 128], strides = [1, 1, 1, 1]} : vector<1x18x16x128xf32> to vector<1x16x16x128xf32>
    %74 = vector.extract_strided_slice %29 {offsets = [2, 0, 0], sizes = [1, 1, 128], strides = [1, 1, 1]} : vector<3x3x128xf32> to vector<1x1x128xf32>
    %75 = vector.shape_cast %74 : vector<1x1x128xf32> to vector<128xf32>
    %76 = vector.shape_cast %75 : vector<128xf32> to vector<1x1x1x128xf32>
    %77 = vector.broadcast %76 : vector<1x1x1x128xf32> to vector<1x16x16x128xf32>
    %78 = arith.mulf %73, %77 : vector<1x16x16x128xf32>
    %79 = arith.addf %72, %78 : vector<1x16x16x128xf32>
    %80 = vector.extract_strided_slice %13 {offsets = [0, 2, 0, 0], sizes = [1, 16, 16, 128], strides = [1, 1, 1, 1]} : vector<1x18x16x128xf32> to vector<1x16x16x128xf32>
    %81 = vector.extract_strided_slice %29 {offsets = [2, 1, 0], sizes = [1, 1, 128], strides = [1, 1, 1]} : vector<3x3x128xf32> to vector<1x1x128xf32>
    %82 = vector.shape_cast %81 : vector<1x1x128xf32> to vector<128xf32>
    %83 = vector.shape_cast %82 : vector<128xf32> to vector<1x1x1x128xf32>
    %84 = vector.broadcast %83 : vector<1x1x1x128xf32> to vector<1x16x16x128xf32>
    %85 = arith.mulf %80, %84 : vector<1x16x16x128xf32>
    %86 = arith.addf %79, %85 : vector<1x16x16x128xf32>
    %87 = vector.extract_strided_slice %28 {offsets = [0, 2, 0, 0], sizes = [1, 16, 16, 128], strides = [1, 1, 1, 1]} : vector<1x18x16x128xf32> to vector<1x16x16x128xf32>
    %88 = vector.extract_strided_slice %29 {offsets = [2, 2, 0], sizes = [1, 1, 128], strides = [1, 1, 1]} : vector<3x3x128xf32> to vector<1x1x128xf32>
    %89 = vector.shape_cast %88 : vector<1x1x128xf32> to vector<128xf32>
    %90 = vector.shape_cast %89 : vector<128xf32> to vector<1x1x1x128xf32>
    %91 = vector.broadcast %90 : vector<1x1x1x128xf32> to vector<1x16x16x128xf32>
    %92 = arith.mulf %87, %91 : vector<1x16x16x128xf32>
    %93 = arith.addf %86, %92 : vector<1x16x16x128xf32>
    %94 = vector.shape_cast %93 : vector<1x16x16x128xf32> to vector<256x128xf32>
    %c0_17 = arith.constant 0 : index
    %c0_18 = arith.constant 0 : index
    %95 = vector.load %arg6[%c0_17, %c0_18] : memref<128x128xf32, #tpu.memory_space<vmem>>, vector<128x128xf32>
    %cst_19 = arith.constant dense<0.000000e+00> : vector<256x128xf32>
    %96 = tpu.matmul %94, %95, %cst_19 {dimension_numbers = #tpu.dot_dimension_numbers<[1], [0], [0], [1], [0, 0, 1, 1], [], []>} : vector<256x128xf32>, vector<128x128xf32>, vector<256x128xf32> -> vector<256x128xf32>
    %97 = vector.shape_cast %96 : vector<256x128xf32> to vector<1x16x16x128xf32>
    %98 = vector.extract_strided_slice %97 {offsets = [0, 0, 0, 0], sizes = [1, 16, 16, 8], strides = [1, 1, 1, 1]} : vector<1x16x16x128xf32> to vector<1x16x16x8xf32>
    %c0_20 = arith.constant 0 : index
    %c0_21 = arith.constant 0 : index
    %c0_22 = arith.constant 0 : index
    %c0_23 = arith.constant 0 : index
    %99 = vector.load %arg7[%c0_20, %c0_21, %c0_22, %c0_23] : memref<1x16x16x8xf32, #tpu.memory_space<vmem>>, vector<1x16x16x8xf32>
    tpu.vector_store %arg7[%c0_20, %c0_21, %c0_22, %c0_23], %98 {strides = array<i32>} : memref<1x16x16x8xf32, #tpu.memory_space<vmem>>, vector<1x16x16x8xf32>,
    return
  }
  func.func @transform_0(%arg0: i32, %arg1: i32) -> (i32, i32, i32, i32) {
    %c0_i32 = arith.constant 0 : i32
    %c0_i32_0 = arith.constant 0 : i32
    %c0_i32_1 = arith.constant 0 : i32
    return %arg0, %arg1, %c0_i32, %c0_i32_0 : i32, i32, i32, i32
  }
  func.func @transform_1(%arg0: i32, %arg1: i32) -> (i32, i32, i32, i32) {
    %c16_i32 = arith.constant 16 : i32
    %0 = arith.muli %arg1, %c16_i32 : i32
    %c1_i32 = arith.constant 1 : i32
    %1 = arith.subi %0, %c1_i32 : i32
    %c0_i32 = arith.constant 0 : i32
    %2 = arith.maxsi %1, %c0_i32 : i32
    %c0_i32_0 = arith.constant 0 : i32
    %c0_i32_1 = arith.constant 0 : i32
    %c0_i32_2 = arith.constant 0 : i32
    return %arg0, %2, %c0_i32_0, %c0_i32_1 : i32, i32, i32, i32
  }
  func.func @transform_2(%arg0: i32, %arg1: i32) -> (i32, i32, i32, i32) {
    %c16_i32 = arith.constant 16 : i32
    %0 = arith.muli %arg1, %c16_i32 : i32
    %c16_i32_0 = arith.constant 16 : i32
    %1 = arith.addi %0, %c16_i32_0 : i32
    %c15_i32 = arith.constant 15 : i32
    %2 = arith.minsi %1, %c15_i32 : i32
    %c0_i32 = arith.constant 0 : i32
    %c0_i32_1 = arith.constant 0 : i32
    %c0_i32_2 = arith.constant 0 : i32
    return %arg0, %2, %c0_i32, %c0_i32_1 : i32, i32, i32, i32
  }
  func.func @transform_3(%arg0: i32, %arg1: i32) -> (i32, i32, i32) {
    %c0_i32 = arith.constant 0 : i32
    %c0_i32_0 = arith.constant 0 : i32
    %c0_i32_1 = arith.constant 0 : i32
    %c0_i32_2 = arith.constant 0 : i32
    return %c0_i32, %c0_i32_0, %c0_i32_1 : i32, i32, i32
  }
  func.func @transform_4(%arg0: i32, %arg1: i32) -> (i32, i32) {
    %c0_i32 = arith.constant 0 : i32
    %c0_i32_0 = arith.constant 0 : i32
    %c0_i32_1 = arith.constant 0 : i32
    return %c0_i32, %c0_i32_0 : i32, i32
  }
  func.func @transform_5(%arg0: i32, %arg1: i32) -> (i32, i32, i32, i32) {
    %c0_i32 = arith.constant 0 : i32
    %c0_i32_0 = arith.constant 0 : i32
    %c0_i32_1 = arith.constant 0 : i32
    return %arg0, %arg1, %c0_i32, %c0_i32_0 : i32, i32, i32, i32
  }
}

</mosaic_0001>

<bundles_post_ra>
// kernel: depthwise_separable_conv.1
= control target key start
LH: loop header
LB: loop body
LE: loop exit
PB: predicated region body
PF: predicated region fallthrough
CT: control target
= control target key end

     0   :  { %s1984_s18 = smov 0   ;;  %s1986_s19 = smov 0   ;;  %s3434_s0 = inlined_call_operand.vmem [shape: f32[2,16,16,128], index: 0, kind: input, shape index: {}, may-alias: {0,1,2}]   ;;  %s3435_s1 = inlined_call_operand.vmem [shape: f32[2,16,16,128], index: 1, kind: input, shape index: {}, may-alias: {0,1,2}]   ;;  %s3436_s2 = inlined_call_operand.vmem [shape: f32[2,16,16,128], index: 2, kind: input, shape index: {}, may-alias: {0,1,2}]   ;;  %s3437_s3 = inlined_call_operand.vmem [shape: f32[3,3,128], index: 3, kind: input, shape index: {}]   ;;  %s3438_s4 = inlined_call_operand.vmem [shape: f32[128,128], index: 4, kind: input, shape index: {}]   ;;  %s3439_s5 = inlined_call_operand.vmem [shape: f32[2,16,16,8], index: 5, kind: output, shape index: {}]  }
   0x1   :  { %s1988_s20 = smov 0  }
   0x2 LB: > { %s27_s21 = sadd.s32 1, %s1947_s19  ;;  %p1705_p0 = scmp.ge.s32.totalorder %s1951_s20, 1  ;;  %s1951_s20 = sphi %s1988_s20, %s15_s20   ;;  %s1947_s19 = sphi %s1986_s19, %s3525_s19   ;;  %s1943_s18 = sphi %s1984_s18, %s3524_s18  }
   0x3   : > { %p29_p1 = scmp.ge.s32.totalorder %s27_s21, 2  ;;  %p273_p2 = scmp.lt.s32.totalorder %s1951_s20, 3 }
   0x5   : > { %s3527_s21 = smov (%p29_p1, %s27_s21), 0  ;;  %p274_p3 = pnand %p1705_p0, %p273_p2 }
   0x7   : > { %277 = sbr.rel (%p274_p3) target bundleno = 434 (0x1b2), region = 40 }
   0xe   : > { %v1289_v0 = vld [vmem:[%s3438_s4] sm:$0xff]  ;;  %v1290_v1 = vld [vmem:[%s3438_s4 + $0x8] sm:$0xff]  ;;  %v1291_v2 = vld [vmem:[%s3438_s4 + $0x10] sm:$0xff]  ;;  %p338_p4 = scmp.lt.s32.totalorder %s1943_s18, 1  ;;  %v441_v3 = vlaneseq  ;;  %v1953_v25 = vmov 0.0   ;;  %vm1530_vm4 = vcmask 64512  }
   0xf   : > { %v1852_v4 = vpack.c.bf16 %v1290_v1, %v1289_v0  ;;  %v1292_v5 = vld [vmem:[%s3438_s4 + $0x18] sm:$0xff]  ;;  %v1293_v6 = vld [vmem:[%s3438_s4 + $0x20] sm:$0xff]  ;;  %v1294_v7 = vld [vmem:[%s3438_s4 + $0x28] sm:$0xff] }
  0x10   : > { %v1856_v8 = vpack.c.bf16 %v1292_v5, %v1291_v2  ;;  %v1295_v9 = vld [vmem:[%s3438_s4 + $0x30] sm:$0xff]  ;;  %v1296_v10 = vld [vmem:[%s3438_s4 + $0x38] sm:$0xff]  ;;  %v1297_v11 = vld [vmem:[%s3438_s4 + $0x40] sm:$0xff]  ;;  %s3529_s18 = smov (!%p338_p4, %s1943_s18), 1  ;;  %v2029_v12 = vshrl.u32 %v441_v3, 7  ;;  %v1860_v13 = vpack.c.bf16 %v1294_v7, %v1293_v6 }
  0x11   : > { %1853 = vmatprep.subr.bf16.mxu0 %v1852_v4  ;;  %1884 = vmatprep.subr.bf16.mxu1 %v1852_v4  ;;  %v1298_v14 = vld [vmem:[%s3438_s4 + $0x48] sm:$0xff]  ;;  %v1299_v15 = vld [vmem:[%s3438_s4 + $0x50] sm:$0xff]  ;;  %v1300_v16 = vld [vmem:[%s3438_s4 + $0x58] sm:$0xff]  ;;  %v2040_v17 = vpack.c.bf16 %v1296_v10, %v1295_v9  ;;  %s2055_s6 = sshll.u32 %s3529_s18, 8 }
  0x12   : > { %1855 = vmatpush3.bf16.msra.mxu0 %v1852_v4  ;;  %1892 = vmatpush3.bf16.msra.mxu1 %v1852_v4  ;;  %v2042_v18 = vpack.c.bf16 %v1298_v14, %v1297_v11  ;;  %v2044_v19 = vpack.c.bf16 %v1300_v16, %v1299_v15  ;;  %v1301_v20 = vld [vmem:[%s3438_s4 + $0x60] sm:$0xff]  ;;  %v1302_v21 = vld [vmem:[%s3438_s4 + $0x68] sm:$0xff]  ;;  %v1303_v22 = vld [vmem:[%s3438_s4 + $0x70] sm:$0xff]  ;;  %vm444_vm0 = vcmp.gt.s32.totalorder %v2029_v12, 0  ;;  %s2067_s11 = scalar_lea.vmem %s3434_s0, %s2055_s6  ;;  %s360_s13 = scalar_lea.vmem %s3435_s1, %s2055_s6  ;;  %vm492_vm1 = vcmp.lt.s32.totalorder %v2029_v12, 1 }
  0x13   : > { %1857 = vmatprep.subr.bf16.mxu0 %v1856_v8  ;;  %1885 = vmatprep.subr.bf16.mxu1 %v1856_v8  ;;  %v2058_v23 = vpack.c.bf16 %v1302_v21, %v1301_v20  ;;  %v1304_v24 = vld [vmem:[%s3438_s4 + $0x78] sm:$0xff]  ;;  %v2074_v26 = vsel %vm444_vm0, 1.0, %v1953_v25  ;;  %v674_v27 = vld [vmem:[%s3437_s3] sm:$0x7]  ;;  %v2081_v28 = vsub.s32 0, %v2029_v12  ;;  %v2089_v31 = vld [vmem:[%s2067_s11 + $0x8] sm:$0xff]  ;;  %s3359_s30 = scalar_lea.vmem %s3439_s5, %s2055_s6 }
  0x14   : > { %v2083_v29 = vpack.c.bf16 %v1304_v24, %v1303_v22  ;;  %v2086_v30 = vld [vmem:[%s2067_s11] sm:$0xff]  ;;  %v2092_v32 = vld [vmem:[%s2067_s11 + $0x10] sm:$0xff]  ;;  %vm601_vm2 = vcmp.lt.s32.totalorder %v2029_v12, 7  ;;  %v2096_v33 = vsub.s32 1, %v2029_v12  ;;  %v2099_v34 = vsub.s32 2, %v2029_v12  ;;  %v2102_v35 = vld [vmem:[%s2067_s11 + $0x18] sm:$0xff] }
  0x15   : > { %v2105_v36 = vld [vmem:[%s2067_s11 + $0x20] sm:$0xff]  ;;  %v2108_v37 = vld [vmem:[%s2067_s11 + $0x28] sm:$0xff]  ;;  %v3442_v38 = vrot.slane %v2086_v30, 7  ;;  %v458_v39 = vrot.slane %v2092_v32, 7  ;;  %v3443_v40 = vrot.slane %v2089_v31, 7  ;;  %v2114_v41 = vrot.slane %v674_v27, %v2081_v28  ;;  %v2177_v4 = vld [vmem:[%s2067_s11 + $0x70] sm:$0xff] }
  0x16   : > { %1859 = vmatpush3.bf16.msra.mxu0 %v1856_v8  ;;  %1893 = vmatpush3.bf16.msra.mxu1 %v1856_v8  ;;  %v431_v42 = vld [vmem:[%s360_s13] sm:$0xff]  ;;  %v432_v43 = vld [vmem:[%s360_s13 + $0x8] sm:$0xff]  ;;  %v3440_v44 = vrot.slane %v2105_v36, 7  ;;  %v476_v45 = vrot.slane %v2102_v35, 7  ;;  %v3441_v46 = vrot.slane %v2108_v37, 7  ;;  %v3461_v47 = vrot.slane %v2086_v30, 1 }
  0x17   : > { %1861 = vmatprep.subr.bf16.mxu0 %v1860_v13  ;;  %1886 = vmatprep.subr.bf16.mxu1 %v1860_v13  ;;  %v2120_v48 = vmul.f32 0.0, %v431_v42  ;;  %v2122_v49 = vmul.f32 0.0, %v432_v43  ;;  %v512_v50 = vsel %vm492_vm1, %v3443_v40, %v3442_v38  ;;  %v3445_v51 = vrot.slane %v2092_v32, 1  ;;  %v675_v0 = vld [vmem:[%s3437_s3 + $0x4] sm:$0x7]  ;;  %s1721_s24 = sadd.s32 240, %s2055_s6 }
  0x18   : > { %v513_v52 = vsel %vm492_vm1, %v476_v45, %v458_v39  ;;  %v514_v53 = vsel %vm492_vm1, %v3441_v46, %v3440_v44  ;;  %v531_v54 = vmul.f32 %v2074_v26, %v512_v50  ;;  %v3446_v55 = vrot.slane %v2089_v31, 1  ;;  %v2198_v9 = vld [vmem:[%s2067_s11 + $0x80] sm:$0xff]  ;;  %v2258_v44 = vld [vmem:[%s2067_s11 + $0x98] sm:$0xff]  ;;  %s377_s27 = scalar_lea.vmem %s3436_s2, %s1721_s24 }
  0x19   : > { %v456_v56 = vrot.slane %v2120_v48, 7  ;;  %v474_v57 = vrot.slane %v2122_v49, 7  ;;  %v2148_v58 = vmul.f32 %v2074_v26, %v513_v52  ;;  %v2151_v59 = vmul.f32 %v2074_v26, %v514_v53 }
  0x1a   : > { %1863 = vmatpush3.bf16.msra.mxu0 %v1860_v13  ;;  %1894 = vmatpush3.bf16.msra.mxu1 %v1860_v13  ;;  %v565_v60 = vrot.slane %v2120_v48, 1  ;;  %v583_v61 = vrot.slane %v2122_v49, 1  ;;  %v3444_v62 = vrot.slane %v2102_v35, 1  ;;  %v603_v63 = vsel %vm601_vm2, %v3461_v47, %v3446_v55 }
  0x1b   : > { %1865 = vmatprep.subr.bf16.mxu0 %v2040_v17  ;;  %1887 = vmatprep.subr.bf16.mxu1 %v2040_v17  ;;  %v511_v1 = vsel %vm492_vm1, %v474_v57, %v456_v56  ;;  %v683_v2 = vmul.f32 %v2114_v41, %v531_v54  ;;  %v685_v3 = vmul.f32 %v2114_v41, %v2148_v58  ;;  %v3457_v21 = vrot.slane %v2177_v4, 7 }
  0x1c   : > { %v529_v5 = vmul.f32 %v2074_v26, %v511_v1  ;;  %v602_v6 = vsel %vm601_vm2, %v565_v60, %v583_v61  ;;  %v2192_v7 = vsel %vm601_vm2, %v3445_v51, %v3444_v62  ;;  %v2195_v8 = vrot.slane %v674_v27, %v2096_v33  ;;  %v2237_v1 = vld [vmem:[%s2067_s11 + $0xa0] sm:$0xff] }
  0x1d   : > { %v2201_v10 = vrot.slane %v674_v27, %v2099_v34  ;;  %v2204_v11 = vrot.slane %v675_v0, %v2081_v28  ;;  %v2207_v13 = vrot.slane %v675_v0, %v2096_v33  ;;  %v2210_v14 = vrot.slane %v675_v0, %v2099_v34  ;;  %v2227_v27 = vld [vmem:[%s2067_s11 + $0x90] sm:$0xff]  ;;  %v2234_v0 = vld [vmem:[%s2067_s11 + $0x78] sm:$0xff] }
  0x1e   : > { %1867 = vmatpush3.bf16.msra.mxu0 %v2040_v17  ;;  %1895 = vmatpush3.bf16.msra.mxu1 %v2040_v17  ;;  %v681_v15 = vmul.f32 %v2114_v41, %v529_v5  ;;  %v749_v16 = vmul.f32 %v2195_v8, %v2120_v48  ;;  %v751_v20 = vmul.f32 %v2195_v8, %v2086_v30  ;;  %v3447_v42 = vrot.slane %v2198_v9, 7  ;;  %v676_v5 = vld [vmem:[%s3437_s3 + $0x8] sm:$0x7] }
  0x1f   : > { %1869 = vmatprep.subr.bf16.mxu0 %v2042_v18  ;;  %1888 = vmatprep.subr.bf16.mxu1 %v2042_v18  ;;  %v753_v22 = vmul.f32 %v2195_v8, %v2092_v32  ;;  %v817_v17 = vmul.f32 %v2201_v10, %v602_v6  ;;  %v819_v24 = vmul.f32 %v2201_v10, %v603_v63  ;;  %v3451_v46 = vrot.slane %v2227_v27, 7 }
  0x20   : > { %v781_v43 = vadd.f32 %v749_v16, %v681_v15  ;;  %v783_v50 = vadd.f32 %v751_v20, %v683_v2  ;;  %v821_v52 = vmul.f32 %v2201_v10, %v2192_v7  ;;  %v885_v53 = vmul.f32 %v2204_v11, %v531_v54 }
  0x21   : > { %v785_v6 = vadd.f32 %v753_v22, %v685_v3  ;;  %v887_v15 = vmul.f32 %v2204_v11, %v2148_v58  ;;  %v2246_v2 = vmul.f32 %v2204_v11, %v2151_v59  ;;  %v953_v54 = vmul.f32 %v2207_v13, %v2086_v30  ;;  %v2255_v22 = vld [vmem:[%s2067_s11 + $0x88] sm:$0xff] }
  0x22   : > { %1871 = vmatpush3.bf16.msra.mxu0 %v2042_v18  ;;  %1896 = vmatpush3.bf16.msra.mxu1 %v2042_v18  ;;  %v849_v16 = vadd.f32 %v817_v17, %v781_v43  ;;  %v851_v20 = vadd.f32 %v819_v24, %v783_v50  ;;  %v955_v3 = vmul.f32 %v2207_v13, %v2092_v32  ;;  %v2267_v18 = vld [vmem:[%s2067_s11 + $0xa8] sm:$0xff]  ;;  %v3449_v17 = vrot.slane %v2237_v1, 7 }
  0x23   : > { %1873 = vmatprep.subr.bf16.mxu0 %v2044_v19  ;;  %1889 = vmatprep.subr.bf16.mxu1 %v2044_v19  ;;  %v2263_v38 = vadd.f32 %v821_v52, %v785_v6  ;;  %v1021_v40 = vmul.f32 %v2210_v14, %v603_v63  ;;  %v3458_v24 = vrot.slane %v2234_v0, 7  ;;  %v2272_v62 = vrot.slane %v676_v5, %v2081_v28 }
  0x24   : > { %v917_v43 = vadd.f32 %v885_v53, %v849_v16  ;;  %v919_v50 = vadd.f32 %v887_v15, %v851_v20  ;;  %v2275_v51 = vrot.slane %v676_v5, %v2096_v33  ;;  %v2279_v52 = vmul.f32 %v2210_v14, %v2192_v7 }
  0x25   : > { %v2282_v63 = vrot.slane %v676_v5, %v2099_v34  ;;  %v3448_v6 = vrot.slane %v2255_v22, 7  ;;  %v3452_v55 = vrot.slane %v2258_v44, 7  ;;  %v1089_v33 = vmul.f32 %v2272_v62, %v2148_v58 }
  0x26   : > { %1875 = vmatpush3.bf16.msra.mxu0 %v2044_v19  ;;  %1897 = vmatpush3.bf16.msra.mxu1 %v2044_v19  ;;  %v985_v28 = vadd.f32 %v953_v54, %v917_v43  ;;  %v987_v53 = vadd.f32 %v955_v3, %v919_v50  ;;  %v3450_v15 = vrot.slane %v2267_v18, 7  ;;  %v1157_v34 = vmul.f32 %v2275_v51, %v2092_v32 }
  0x27   : > { %1877 = vmatprep.subr.bf16.mxu0 %v2058_v23  ;;  %1890 = vmatprep.subr.bf16.mxu1 %v2058_v23  ;;  %v1225_v5 = vmul.f32 %v2282_v63, %v2192_v7  ;;  %v519_v19 = vsel %vm492_vm1, %v3458_v24, %v3457_v21  ;;  %v443_v58 = vadd.s32 8, %v2029_v12  ;;  %v520_v16 = vsel %vm492_vm1, %v3448_v6, %v3447_v42 }
  0x28   : > { %v1053_v54 = vadd.f32 %v1021_v40, %v985_v28  ;;  %v521_v7 = vsel %vm492_vm1, %v3452_v55, %v3451_v46  ;;  %v3454_v20 = vrot.slane %v2177_v4, 1  ;;  %v522_v40 = vsel %vm492_vm1, %v3450_v15, %v3449_v17 }
  0x29   : > { %v2324_v3 = vmul.f32 %v2074_v26, %v519_v19  ;;  %v2327_v43 = vmul.f32 %v2074_v26, %v520_v16  ;;  %v549_v50 = vmul.f32 %v2074_v26, %v521_v7  ;;  %v2333_v42 = vmul.f32 %v2074_v26, %v522_v40 }
  0x2a   : > { %1879 = vmatpush3.bf16.msra.mxu0 %v2058_v23  ;;  %1898 = vmatpush3.bf16.msra.mxu1 %v2058_v23  ;;  %v1121_v28 = vadd.f32 %v1089_v33, %v1053_v54  ;;  %v3456_v6 = vrot.slane %v2198_v9, 1  ;;  %v3460_v17 = vrot.slane %v2227_v27, 1  ;;  %v3453_v19 = vrot.slane %v2234_v0, 1 }
  0x2b   : > { %3474 = vst [vmem:[#allocation2_spill] sm:$0xff] %v2324_v3  ;;  %3475 = vst [vmem:[#allocation3_spill] sm:$0xff] %v2327_v43  ;;  %1881 = vmatprep.subr.bf16.mxu0 %v2083_v29  ;;  %1891 = vmatprep.subr.bf16.mxu1 %v2083_v29  ;;  %v3455_v16 = vrot.slane %v2255_v22, 1  ;;  %v3459_v7 = vrot.slane %v2258_v44, 1  ;;  %v697_v23 = vmul.f32 %v2114_v41, %v2324_v3  ;;  %vm451_vm3 = vcmp.lt.s32.totalorder %v443_v58, 15 }
  0x2c   : > { %v1189_v33 = vadd.f32 %v1157_v34, %v1121_v28  ;;  %v699_v54 = vmul.f32 %v2114_v41, %v2327_v43  ;;  %v701_v40 = vmul.f32 %v2114_v41, %v549_v50  ;;  %v765_v15 = vmul.f32 %v2195_v8, %v2177_v4 }
  0x2d   : > { %v2355_v46 = vsel %vm601_vm2, %v3454_v20, %v3453_v19  ;;  %v2363_v34 = vsel %vm601_vm2, %v3456_v6, %v3455_v16  ;;  %v612_v28 = vsel %vm601_vm2, %v3460_v17, %v3459_v7  ;;  %v767_v55 = vmul.f32 %v2195_v8, %v2198_v9 }
  0x2e   : > { %3476 = vst [vmem:[#allocation4_spill] sm:$0xff] %v2355_v46  ;;  %3477 = vst [vmem:[#allocation5_spill] sm:$0xff] %v2363_v34  ;;  %1883 = vmatpush3.bf16.msra.mxu0 %v2083_v29  ;;  %1899 = vmatpush3.bf16.msra.mxu1 %v2083_v29  ;;  %v1257_v19 = vadd.f32 %v1225_v5, %v1189_v33  ;;  %v769_v20 = vmul.f32 %v2195_v8, %v2227_v27 }
  0x2f   : > { %v797_v16 = vadd.f32 %v765_v15, %v697_v23  ;;  %v799_v6 = vadd.f32 %v767_v55, %v699_v54  ;;  %v833_v21 = vmul.f32 %v2201_v10, %v2355_v46  ;;  %v835_v24 = vmul.f32 %v2201_v10, %v2363_v34 }
  0x30   : > { %v837_v7 = vmul.f32 %v2201_v10, %v612_v28  ;;  %1804 = vmatprep.mubr.f32.mxu0 %v1257_v19  ;;  %v801_v17 = vadd.f32 %v769_v20, %v701_v40  ;;  %v901_v47 = vmul.f32 %v2204_v11, %v2327_v43  ;;  %v903_v29 = vmul.f32 %v2204_v11, %v549_v50 }
  0x31   : > { %v865_v5 = vadd.f32 %v833_v21, %v797_v16  ;;  %v867_v33 = vadd.f32 %v835_v24, %v799_v6  ;;  %v969_v55 = vmul.f32 %v2207_v13, %v2198_v9  ;;  %v971_v15 = vmul.f32 %v2207_v13, %v2227_v27 }
  0x32   : > { %v2391_v23 = vadd.f32 %v2246_v2, %v2263_v38  ;;  %v2394_v20 = vadd.f32 %v2279_v52, %v987_v53  ;;  %v869_v19 = vadd.f32 %v837_v7, %v801_v17  ;;  %v905_v54 = vmul.f32 %v2204_v11, %v2333_v42 }
  0x33   : > { %v933_v58 = vadd.f32 %v901_v47, %v865_v5  ;;  %v935_v21 = vadd.f32 %v903_v29, %v867_v33  ;;  %v1037_v24 = vmul.f32 %v2210_v14, %v2363_v34  ;;  %v1039_v6 = vmul.f32 %v2210_v14, %v612_v28 }
  0x34   : > { %v1105_v16 = vmul.f32 %v2272_v62, %v549_v50  ;;  %v1173_v38 = vmul.f32 %v2275_v51, %v2227_v27  ;;  %v2405_v2 = vsel %vm451_vm3, 1.0, %v1953_v25  ;;  %v493_v47 = vsel %vm492_vm1, %v456_v56, %v474_v57 }
  0x35   : > { %v1001_v17 = vadd.f32 %v969_v55, %v933_v58  ;;  %v1003_v52 = vadd.f32 %v971_v15, %v935_v21  ;;  %v495_v53 = vsel %vm492_vm1, %v458_v39, %v476_v45  ;;  %v620_v25 = vsel %vm601_vm2, %v583_v61, %v565_v60 }
  0x36   : > { %v3478_v50 = vrot.slane %v2086_v30, 1  ;;  %v3479_v56 = vrot.slane %v2089_v31, 1  ;;  %v3480_v7 = vrot.slane %v2092_v32, 1  ;;  %v3481_v40 = vrot.slane %v2102_v35, 1 }
  0x37   : > { %v639_v45 = vmul.f32 %v2405_v2, %v620_v25  ;;  %v682_v48 = vmul.f32 %v2114_v41, %v493_v47  ;;  %v1069_v29 = vadd.f32 %v1037_v24, %v1001_v17  ;;  %v3482_v60 = vrot.slane %v2089_v31, 7 }
  0x38   : > { %v621_v57 = vsel %vm601_vm2, %v3479_v56, %v3478_v50  ;;  %v622_v39 = vsel %vm601_vm2, %v3481_v40, %v3480_v7  ;;  %v3483_v61 = vrot.slane %v2086_v30, 7  ;;  %v1241_v55 = vmul.f32 %v2282_v63, %v612_v28 }
  0x39   : > { %v641_v33 = vmul.f32 %v2405_v2, %v621_v57  ;;  %v2447_v32 = vmul.f32 %v2405_v2, %v622_v39  ;;  %v686_v15 = vmul.f32 %v2114_v41, %v495_v53  ;;  %v750_v58 = vmul.f32 %v2195_v8, %v2122_v49 }
  0x3a   : > { %v494_v5 = vsel %vm492_vm1, %v3483_v61, %v3482_v60  ;;  %v754_v21 = vmul.f32 %v2195_v8, %v2102_v35  ;;  %v2455_v24 = vadd.f32 %v905_v54, %v869_v19  ;;  %v2457_v30 = vadd.f32 %v1039_v6, %v1003_v52 }
  0x3b   : > { %v1137_v47 = vadd.f32 %v1105_v16, %v1069_v29  ;;  %v818_v17 = vmul.f32 %v2201_v10, %v639_v45  ;;  %v2461_v25 = vmul.f32 %v2114_v41, %v494_v5  ;;  %v782_v50 = vadd.f32 %v750_v58, %v682_v48 }
  0x3c   : > { %v2464_v28 = vmul.f32 %v2201_v10, %v641_v33  ;;  %v886_v56 = vmul.f32 %v2204_v11, %v494_v5  ;;  %v2467_v57 = vadd.f32 %v754_v21, %v686_v15  ;;  %v2471_v19 = vmul.f32 %v2201_v10, %v2447_v32 }
  0x3d   : > { %v1205_v49 = vadd.f32 %v1173_v38, %v1137_v47  ;;  %v2474_v54 = vmul.f32 %v2204_v11, %v495_v53  ;;  %v850_v6 = vadd.f32 %v818_v17, %v782_v50  ;;  %v954_v16 = vmul.f32 %v2207_v13, %v2089_v31 }
  0x3e   : > { %v1022_v52 = vmul.f32 %v2210_v14, %v641_v33  ;;  %v3484_v7 = vrot.slane %v2234_v0, 7  ;;  %v3485_v40 = vrot.slane %v2177_v4, 7  ;;  %v1090_v45 = vmul.f32 %v2272_v62, %v495_v53 }
  0x3f   : > { %v1273_v39 = vadd.f32 %v1241_v55, %v1205_v49  ;;  %v3487_v48 = vrot.slane %v2258_v44, 7  ;;  %v3488_v29 = vrot.slane %v2227_v27, 7  ;;  %v3489_v61 = vrot.slane %v2177_v4, 1 }
  0x40   : > { %v2485_v38 = vsel %vm492_vm1, %v3485_v40, %v3484_v7  ;;  %v3490_v5 = vrot.slane %v2234_v0, 1  ;;  %v918_v15 = vadd.f32 %v886_v56, %v850_v6  ;;  %v3491_v58 = vrot.slane %v2198_v9, 1 }
  0x41   : > { %3486 = vst [vmem:[#allocation6_spill] sm:$0xff] %v2485_v38  ;;  %v503_v60 = vsel %vm492_vm1, %v3488_v29, %v3487_v48  ;;  %v3492_v55 = vrot.slane %v2255_v22, 1  ;;  %v3493_v21 = vrot.slane %v2227_v27, 1  ;;  %v3494_v47 = vrot.slane %v2258_v44, 1  ;;  %1828 = vmatprep.mubr.f32.mxu1 %v1273_v39 }
  0x42   : > { %v628_v33 = vsel %vm601_vm2, %v3490_v5, %v3489_v61  ;;  %v3496_v50 = vrot.slane %v2255_v22, 7  ;;  %v3497_v56 = vrot.slane %v2198_v9, 7  ;;  %v698_v27 = vmul.f32 %v2114_v41, %v2485_v38 }
  0x43   : > { %v629_v53 = vsel %vm601_vm2, %v3492_v55, %v3491_v58  ;;  %v630_v4 = vsel %vm601_vm2, %v3494_v47, %v3493_v21  ;;  %v2513_v17 = vmul.f32 %v2405_v2, %v628_v33  ;;  %v702_v7 = vmul.f32 %v2114_v41, %v503_v60 }
  0x44   : > { %v2521_v49 = vsel %vm492_vm1, %v3497_v56, %v3496_v50  ;;  %v2524_v6 = vmul.f32 %v2405_v2, %v630_v4  ;;  %v986_v40 = vadd.f32 %v954_v16, %v918_v15  ;;  %v766_v39 = vmul.f32 %v2195_v8, %v2234_v0 }
  0x45   : > { %3495 = vst [vmem:[#allocation7_spill] sm:$0xff] %v2513_v17  ;;  %3498 = vst [vmem:[#allocation8_spill] sm:$0xff] %v2521_v49  ;;  %v770_v48 = vmul.f32 %v2195_v8, %v2258_v44  ;;  %v834_v9 = vmul.f32 %v2201_v10, %v2513_v17  ;;  %v1158_v29 = vmul.f32 %v2275_v51, %v2102_v35  ;;  %v568_v47 = vrot.slane %v2105_v36, 1 }
  0x46   : > { %v1226_v61 = vmul.f32 %v2282_v63, %v2447_v32  ;;  %v2540_v5 = vmul.f32 %v2405_v2, %v629_v53  ;;  %v2544_v16 = vmul.f32 %v2201_v10, %v2524_v6  ;;  %v1054_v0 = vadd.f32 %v1022_v52, %v986_v40 }
  0x47   : > { %v798_v33 = vadd.f32 %v766_v39, %v698_v27  ;;  %v902_v15 = vmul.f32 %v2204_v11, %v2521_v49  ;;  %v2549_v58 = vmul.f32 %v2204_v11, %v503_v60  ;;  %v2551_v55 = vadd.f32 %v770_v48, %v702_v7 }
  0x48   : > { %3499 = vst [vmem:[#allocation9_spill] sm:$0xff] %v2540_v5  ;;  %3500 = vst [vmem:[#allocation10_spill] sm:$0xff] %v2544_v16  ;;  %v970_v21 = vmul.f32 %v2207_v13, %v2255_v22  ;;  %v1038_v53 = vmul.f32 %v2210_v14, %v2540_v5  ;;  %v1122_v4 = vadd.f32 %v1090_v45, %v1054_v0  ;;  %v586_v52 = vrot.slane %v2108_v37, 1 }
  0x49   : > { %v866_v50 = vadd.f32 %v834_v9, %v798_v33  ;;  %v687_v56 = vmul.f32 %v2114_v41, %v2151_v59  ;;  %v755_v27 = vmul.f32 %v2195_v8, %v2105_v36  ;;  %v1091_v7 = vmul.f32 %v2272_v62, %v2151_v59 }
  0x4a   : > { %v1159_v40 = vmul.f32 %v2275_v51, %v2105_v36  ;;  %v576_v39 = vrot.slane %v2237_v1, 1  ;;  %v1190_v48 = vadd.f32 %v1158_v29, %v1122_v4  ;;  %v1106_v45 = vmul.f32 %v2272_v62, %v503_v60 }
  0x4b   : > { %v934_v34 = vadd.f32 %v902_v15, %v866_v50  ;;  %v594_v9 = vrot.slane %v2267_v18, 1  ;;  %v1174_v0 = vmul.f32 %v2275_v51, %v2258_v44  ;;  %v1242_v33 = vmul.f32 %v2282_v63, %v2524_v6 }
  0x4c   : > { %v605_v59 = vsel %vm601_vm2, %v568_v47, %v586_v52  ;;  %v1123_v43 = vadd.f32 %v1091_v7, %v2394_v20  ;;  %v1258_v17 = vadd.f32 %v1226_v61, %v1190_v48  ;;  %v787_v15 = vadd.f32 %v755_v27, %v687_v56 }
  0x4d   : > { %v1002_v38 = vadd.f32 %v970_v21, %v934_v34  ;;  %v1227_v29 = vmul.f32 %v2282_v63, %v605_v59  ;;  %v613_v60 = vsel %vm601_vm2, %v576_v39, %v594_v9  ;;  %v703_v50 = vmul.f32 %v2114_v41, %v2333_v42 }
  0x4e   : > { %v1191_v4 = vadd.f32 %v1159_v40, %v1123_v43  ;;  %v771_v46 = vmul.f32 %v2195_v8, %v2237_v1  ;;  %1805 = vmatmul.mubr.f32.vlgmr.msra.gmra.mrb[0].mxu0 %v1258_v17  ;;  %v823_v16 = vmul.f32 %v2201_v10, %v605_v59  ;;  %v839_v20 = vmul.f32 %v2201_v10, %v613_v60 }
  0x4f   : > { %v1070_v3 = vadd.f32 %v1038_v53, %v1002_v38  ;;  %v1107_v34 = vmul.f32 %v2272_v62, %v2333_v42  ;;  %v1175_v43 = vmul.f32 %v2275_v51, %v2237_v1  ;;  %v1243_v56 = vmul.f32 %v2282_v63, %v613_v60 }
  0x50   : > { %v1259_v61 = vadd.f32 %v1227_v29, %v1191_v4  ;;  %v803_v21 = vadd.f32 %v771_v46, %v703_v50  ;;  %v3501_v17 = vrot.slane %v2108_v37, 7  ;;  %v3502_v38 = vrot.slane %v2105_v36, 7 }
  0x51   : > { %v1138_v27 = vadd.f32 %v1106_v45, %v1070_v3  ;;  %v1139_v7 = vadd.f32 %v1107_v34, %v2457_v30  ;;  %v623_v42 = vsel %vm601_vm2, %v586_v52, %v568_v47  ;;  %v2601_v46 = vmul.f32 %v2210_v14, %v605_v59 }
  0x52   : > { %v496_v53 = vsel %vm492_vm1, %v3502_v38, %v3501_v17  ;;  %1807 = vmatprep.mubr.f32.mxu0 %v1259_v61  ;;  %v2604_v40 = vmul.f32 %v2405_v2, %v623_v42  ;;  %v752_v30 = vmul.f32 %v2195_v8, %v2089_v31  ;;  %v2609_v45 = vadd.f32 %v823_v16, %v787_v15  ;;  %v2663_v38 = vld [vmem:[%s2067_s11 + $0x38] sm:$0xff] }
  0x53   : > { %v688_v3 = vmul.f32 %v2114_v41, %v496_v53  ;;  %v1206_v48 = vadd.f32 %v1174_v0, %v1138_v27  ;;  %v1207_v29 = vadd.f32 %v1175_v43, %v1139_v7  ;;  %v756_v4 = vmul.f32 %v2195_v8, %v2108_v37 }
  0x54   : > { %v2613_v47 = vadd.f32 %v839_v20, %v803_v21  ;;  %v2616_v52 = vmul.f32 %v2210_v14, %v613_v60  ;;  %v784_v59 = vadd.f32 %v752_v30, %v2461_v25  ;;  %v2620_v50 = vmul.f32 %v2204_v11, %v496_v53 }
  0x55   : > { %v1274_v34 = vadd.f32 %v1242_v33, %v1206_v48  ;;  %v1275_v61 = vadd.f32 %v1243_v56, %v1207_v29  ;;  %v2624_v31 = vmul.f32 %v2201_v10, %v2604_v40  ;;  %v956_v16 = vmul.f32 %v2207_v13, %v2102_v35 }
  0x56   : > { %v2628_v0 = vadd.f32 %v756_v4, %v688_v3  ;;  %v852_v60 = vadd.f32 %v2464_v28, %v784_v59  ;;  %v1024_v25 = vmul.f32 %v2210_v14, %v2447_v32  ;;  %v3503_v15 = vrot.slane %v2267_v18, 7 }
  0x57   : > { %v3504_v33 = vrot.slane %v2237_v1, 7  ;;  %1829 = vmatmul.mubr.f32.vlgmr.msra.gmra.mrb[0].mxu1 %v1274_v34  ;;  %v631_v21 = vsel %vm601_vm2, %v594_v9, %v576_v39  ;;  %v700_v35 = vmul.f32 %v2114_v41, %v2521_v49  ;;  %v768_v32 = vmul.f32 %v2195_v8, %v2255_v22  ;;  %v2655_v9 = vld [vmem:[%s2067_s11 + $0x30] sm:$0xff] }
  0x58   : > { %1831 = vmatprep.mubr.f32.mxu1 %v1275_v61  ;;  %v920_v43 = vadd.f32 %v2474_v54, %v852_v60  ;;  %v2648_v56 = vmul.f32 %v2405_v2, %v631_v21  ;;  %v772_v27 = vmul.f32 %v2195_v8, %v2267_v18  ;;  %v836_v39 = vmul.f32 %v2201_v10, %v2540_v5  ;;  %v2680_v34 = vld [vmem:[%s2067_s11 + $0xb0] sm:$0xff] }
  0x59   : > { %v504_v20 = vsel %vm492_vm1, %v3504_v33, %v3503_v15  ;;  %v1092_v7 = vmul.f32 %v2272_v62, %v496_v53  ;;  %v1160_v22 = vmul.f32 %v2275_v51, %v2108_v37  ;;  %v1228_v54 = vmul.f32 %v2282_v63, %v2604_v40 }
  0x5a   : > { %v704_v28 = vmul.f32 %v2114_v41, %v504_v20  ;;  %v800_v17 = vadd.f32 %v768_v32, %v700_v35  ;;  %v988_v42 = vadd.f32 %v956_v16, %v920_v43  ;;  %v2666_v3 = vmul.f32 %v2204_v11, %v504_v20  ;;  %v2692_v35 = vld [vmem:[%s2067_s11 + $0xb8] sm:$0xff] }
  0x5b   : > { %v972_v30 = vmul.f32 %v2207_v13, %v2258_v44  ;;  %v1040_v53 = vmul.f32 %v2210_v14, %v2524_v6  ;;  %v2676_v29 = vmul.f32 %v2201_v10, %v2648_v56  ;;  %v460_v59 = vrot.slane %v2655_v9, 7 }
  0x5c   : > { %v2672_v48 = vadd.f32 %v772_v27, %v704_v28  ;;  %v868_v4 = vadd.f32 %v836_v39, %v800_v17  ;;  %v1056_v61 = vadd.f32 %v1024_v25, %v988_v42  ;;  %v478_v16 = vrot.slane %v2663_v38, 7 }
  0x5d   : > { %3506 = vst [vmem:[#allocation12_spill] sm:$0xff] %v2676_v29  ;;  %v569_v60 = vrot.slane %v2655_v9, 1  ;;  %v587_v44 = vrot.slane %v2663_v38, 1  ;;  %v1108_v15 = vmul.f32 %v2272_v62, %v504_v20  ;;  %v1176_v33 = vmul.f32 %v2275_v51, %v2267_v18 }
  0x5e   : > { %3505 = vst [vmem:[#allocation11_spill] sm:$0xff] %v2672_v48  ;;  %v936_v6 = vadd.f32 %v2549_v58, %v868_v4  ;;  %v957_v21 = vmul.f32 %v2207_v13, %v2105_v36  ;;  %v1124_v28 = vadd.f32 %v1092_v7, %v1056_v61  ;;  %v1244_v25 = vmul.f32 %v2282_v63, %v2648_v56 }
  0x5f   : > { %v515_v32 = vsel %vm492_vm1, %v478_v16, %v460_v59  ;;  %v468_v43 = vrot.slane %v2680_v34, 7  ;;  %v757_v27 = vmul.f32 %v2195_v8, %v2655_v9  ;;  %v606_v7 = vsel %vm601_vm2, %v569_v60, %v587_v44 }
  0x60   : > { %v1004_v58 = vadd.f32 %v972_v30, %v936_v6  ;;  %v2700_v20 = vmul.f32 %v2074_v26, %v515_v32  ;;  %v989_v36 = vadd.f32 %v957_v21, %v2391_v23  ;;  %v1192_v39 = vadd.f32 %v1160_v22, %v1124_v28 }
  0x61   : > { %v1161_v17 = vmul.f32 %v2275_v51, %v2655_v9  ;;  %v486_v42 = vrot.slane %v2692_v35, 7  ;;  %v577_v22 = vrot.slane %v2680_v34, 1  ;;  %v595_v21 = vrot.slane %v2692_v35, 1 }
  0x62   : > { %v1072_v4 = vadd.f32 %v1040_v53, %v1004_v58  ;;  %v689_v30 = vmul.f32 %v2114_v41, %v2700_v20  ;;  %v1057_v61 = vadd.f32 %v2601_v46, %v989_v36  ;;  %v1093_v6 = vmul.f32 %v2272_v62, %v2700_v20 }
  0x63   : > { %v1260_v32 = vadd.f32 %v1228_v54, %v1192_v39  ;;  %v523_v23 = vsel %vm492_vm1, %v486_v42, %v468_v43  ;;  %v1229_v53 = vmul.f32 %v2282_v63, %v606_v7  ;;  %v825_v46 = vmul.f32 %v2201_v10, %v606_v7 }
  0x64   : > { %v1140_v28 = vadd.f32 %v1108_v15, %v1072_v4  ;;  %v1125_v5 = vadd.f32 %v1093_v6, %v1057_v61  ;;  %v2721_v58 = vmul.f32 %v2074_v26, %v523_v23  ;;  %v614_v54 = vsel %vm601_vm2, %v577_v22, %v595_v21 }
  0x65   : > { %1808 = vmatmul.mubr.f32.gmra.mrb[2].mxu0 %v1260_v32  ;;  %v773_v36 = vmul.f32 %v2195_v8, %v2680_v34  ;;  %v973_v39 = vmul.f32 %v2207_v13, %v2237_v1  ;;  %v789_v15 = vadd.f32 %v757_v27, %v689_v30  ;;  %v2733_v6 = vmul.f32 %v2210_v14, %v606_v7  ;;  %v2749_v30 = vld [vmem:[%s2067_s11 + $0x40] sm:$0xff] }
  0x66   : > { %v1208_v49 = vadd.f32 %v1176_v33, %v1140_v28  ;;  %v1193_v4 = vadd.f32 %v1161_v17, %v1125_v5  ;;  %v705_v61 = vmul.f32 %v2114_v41, %v2721_v58  ;;  %v1109_v23 = vmul.f32 %v2272_v62, %v2721_v58 }
  0x67   : > { %v1005_v32 = vadd.f32 %v973_v39, %v2455_v24  ;;  %v1177_v29 = vmul.f32 %v2275_v51, %v2680_v34  ;;  %v841_v27 = vmul.f32 %v2201_v10, %v614_v54  ;;  %v497_v17 = vsel %vm492_vm1, %v460_v59, %v478_v16 }
  0x68   : > { %v1276_v48 = vadd.f32 %v1244_v25, %v1208_v49  ;;  %v1261_v1 = vadd.f32 %v1229_v53, %v1193_v4  ;;  %v805_v33 = vadd.f32 %v773_v36, %v705_v61  ;;  %v624_v7 = vsel %vm601_vm2, %v587_v44, %v569_v60  ;;  %v3507_v4 = vld [vmem:[#allocation10_spill] sm:$0xff] }
  0x69   : > { %v1073_v5 = vadd.f32 %v2616_v52, %v1005_v32  ;;  %v758_v24 = vmul.f32 %v2195_v8, %v2663_v38  ;;  %v2751_v28 = vadd.f32 %v825_v46, %v789_v15  ;;  %v2754_v49 = vmul.f32 %v2405_v2, %v624_v7 }
  0x6a   : > { %1832 = vmatmul.mubr.f32.gmra.mrb[2].mxu1 %v1276_v48  ;;  %1810 = vmatprep.mubr.f32.mxu0 %v1261_v1  ;;  %v690_v52 = vmul.f32 %v2114_v41, %v497_v17  ;;  %v1245_v59 = vmul.f32 %v2282_v63, %v614_v54  ;;  %v854_v16 = vadd.f32 %v2471_v19, %v2467_v57  ;;  %v461_v46 = vrot.slane %v2749_v30, 7 }
  0x6b   : > { %v1141_v25 = vadd.f32 %v1109_v23, %v1073_v5  ;;  %v958_v60 = vmul.f32 %v2207_v13, %v2108_v37  ;;  %v2762_v44 = vadd.f32 %v841_v27, %v805_v33  ;;  %v2765_v48 = vmul.f32 %v2210_v14, %v614_v54  ;;  %v2790_v23 = vld [vmem:[%s2067_s11 + $0x48] sm:$0xff] }
  0x6c   : > { %v2768_v53 = vmul.f32 %v2204_v11, %v497_v17  ;;  %v2771_v39 = vadd.f32 %v758_v24, %v690_v52  ;;  %v922_v15 = vadd.f32 %v2620_v50, %v854_v16  ;;  %v1026_v57 = vmul.f32 %v2210_v14, %v2604_v40 }
  0x6d   : > { %v1209_v36 = vadd.f32 %v1177_v29, %v1141_v25  ;;  %v2778_v37 = vmul.f32 %v2201_v10, %v2754_v49  ;;  %v505_v19 = vsel %vm492_vm1, %v468_v43, %v486_v42  ;;  %v632_v54 = vsel %vm601_vm2, %v595_v21, %v577_v22 }
  0x6e   : > { %v870_v29 = vadd.f32 %v3507_v4, %v2551_v55  ;;  %v990_v32 = vadd.f32 %v958_v60, %v922_v15  ;;  %v1094_v50 = vmul.f32 %v2272_v62, %v497_v17  ;;  %v1162_v40 = vmul.f32 %v2275_v51, %v2663_v38  ;;  %v2833_v4 = vld [vmem:[%s2067_s11 + $0xc8] sm:$0xff] }
  0x6f   : > { %v1277_v61 = vadd.f32 %v1245_v59, %v1209_v36  ;;  %v1230_v1 = vmul.f32 %v2282_v63, %v2754_v49  ;;  %v974_v42 = vmul.f32 %v2207_v13, %v2267_v18  ;;  %v1042_v55 = vmul.f32 %v2210_v14, %v2648_v56 }
  0x70   : > { %v938_v43 = vadd.f32 %v2666_v3, %v870_v29  ;;  %v1058_v22 = vadd.f32 %v1026_v57, %v990_v32  ;;  %v2800_v21 = vmul.f32 %v2405_v2, %v632_v54  ;;  %v706_v33 = vmul.f32 %v2114_v41, %v505_v19  ;;  %v2830_v54 = vld [vmem:[%s2067_s11 + $0xc0] sm:$0xff] }
  0x71   : > { %1834 = vmatprep.mubr.f32.mxu1 %v1277_v61  ;;  %v774_v27 = vmul.f32 %v2195_v8, %v2692_v35  ;;  %v2806_v5 = vmul.f32 %v2204_v11, %v505_v19  ;;  %v1110_v18 = vmul.f32 %v2272_v62, %v505_v19  ;;  %v479_v56 = vrot.slane %v2790_v23, 7 }
  0x72   : > { %v1006_v3 = vadd.f32 %v974_v42, %v938_v43  ;;  %v1126_v17 = vadd.f32 %v1094_v50, %v1058_v22  ;;  %v1178_v7 = vmul.f32 %v2275_v51, %v2692_v35  ;;  %v570_v24 = vrot.slane %v2749_v30, 1 }
  0x73   : > { %v588_v52 = vrot.slane %v2790_v23, 1  ;;  %v516_v59 = vsel %vm492_vm1, %v479_v56, %v461_v46  ;;  %v891_v16 = vmul.f32 %v2204_v11, %v2700_v20  ;;  %v959_v60 = vmul.f32 %v2207_v13, %v2655_v9 }
  0x74   : > { %v1074_v25 = vadd.f32 %v1042_v55, %v1006_v3  ;;  %v1194_v36 = vadd.f32 %v1162_v40, %v1126_v17  ;;  %v2822_v15 = vadd.f32 %v774_v27, %v706_v33  ;;  %v2825_v57 = vmul.f32 %v2074_v26, %v516_v59 }
  0x75   : > { %v759_v19 = vmul.f32 %v2195_v8, %v2749_v30  ;;  %v1246_v20 = vmul.f32 %v2282_v63, %v2800_v21  ;;  %v607_v9 = vsel %vm601_vm2, %v570_v24, %v588_v52  ;;  %v923_v61 = vadd.f32 %v891_v16, %v2609_v45 }
  0x76   : > { %v1142_v29 = vadd.f32 %v1110_v18, %v1074_v25  ;;  %v1262_v32 = vadd.f32 %v1230_v1, %v1194_v36  ;;  %v691_v50 = vmul.f32 %v2114_v41, %v2825_v57  ;;  %v1095_v40 = vmul.f32 %v2272_v62, %v2825_v57 }
  0x77   : > { %v1163_v43 = vmul.f32 %v2275_v51, %v2749_v30  ;;  %v991_v55 = vadd.f32 %v959_v60, %v923_v61  ;;  %v469_v22 = vrot.slane %v2830_v54, 7  ;;  %v487_v33 = vrot.slane %v2833_v4, 7 }
  0x78   : > { %v1210_v42 = vadd.f32 %v1178_v7, %v1142_v29  ;;  %1811 = vmatmul.mubr.f32.gmra.mrb[4].mxu0 %v1262_v32  ;;  %v791_v27 = vadd.f32 %v759_v19, %v691_v50  ;;  %v827_v45 = vmul.f32 %v2201_v10, %v607_v9  ;;  %v578_v1 = vrot.slane %v2830_v54, 1 }
  0x79   : > { %v596_v3 = vrot.slane %v2833_v4, 1  ;;  %v1059_v17 = vadd.f32 %v2733_v6, %v991_v55  ;;  %v524_v25 = vsel %vm492_vm1, %v487_v33, %v469_v22  ;;  %v907_v7 = vmul.f32 %v2204_v11, %v2721_v58 }
  0x7a   : > { %v1278_v18 = vadd.f32 %v1246_v20, %v1210_v42  ;;  %v2858_v59 = vmul.f32 %v2201_v10, %v2800_v21  ;;  %v2861_v16 = vmul.f32 %v2074_v26, %v524_v25  ;;  %v775_v60 = vmul.f32 %v2195_v8, %v2830_v54 }
  0x7b   : > { %v975_v36 = vmul.f32 %v2207_v13, %v2680_v34  ;;  %v1127_v6 = vadd.f32 %v1095_v40, %v1059_v17  ;;  %v1231_v19 = vmul.f32 %v2282_v63, %v607_v9  ;;  %v615_v58 = vsel %vm601_vm2, %v578_v1, %v596_v3 }
  0x7c   : > { %1835 = vmatmul.mubr.f32.gmra.mrb[4].mxu1 %v1278_v18  ;;  %v939_v29 = vadd.f32 %v907_v7, %v2613_v47  ;;  %v2871_v20 = vadd.f32 %v827_v45, %v791_v27  ;;  %v2874_v61 = vmul.f32 %v2210_v14, %v607_v9  ;;  %v707_v32 = vmul.f32 %v2114_v41, %v2861_v16 }
  0x7d   : > { %v1111_v34 = vmul.f32 %v2272_v62, %v2861_v16  ;;  %v1195_v50 = vadd.f32 %v1163_v43, %v1127_v6  ;;  %v498_v42 = vsel %vm492_vm1, %v461_v46, %v479_v56  ;;  %v625_v47 = vsel %vm601_vm2, %v588_v52, %v570_v24 }
  0x7e   : > { %v1007_v40 = vadd.f32 %v975_v36, %v939_v29  ;;  %v807_v55 = vadd.f32 %v775_v60, %v707_v32  ;;  %v843_v9 = vmul.f32 %v2201_v10, %v615_v58  ;;  %v692_v27 = vmul.f32 %v2114_v41, %v498_v42 }
  0x7f   : > { %v760_v45 = vmul.f32 %v2195_v8, %v2790_v23  ;;  %v1263_v18 = vadd.f32 %v1231_v19, %v1195_v50  ;;  %v1179_v17 = vmul.f32 %v2275_v51, %v2830_v54  ;;  %v856_v46 = vadd.f32 %v2624_v31, %v2628_v0  ;;  %v3509_v50 = vld [vmem:[#allocation12_spill] sm:$0xff] }
  0x80   : > { %v1075_v43 = vadd.f32 %v2765_v48, %v1007_v40  ;;  %v2896_v56 = vmul.f32 %v2210_v14, %v615_v58  ;;  %v1247_v24 = vmul.f32 %v2282_v63, %v615_v58  ;;  %v2900_v52 = vmul.f32 %v2405_v2, %v625_v47 }
  0x81   : > { %v960_v25 = vmul.f32 %v2207_v13, %v2663_v38  ;;  %1813 = vmatprep.mubr.f32.mxu0 %v1263_v18  ;;  %v2905_v48 = vmul.f32 %v2204_v11, %v498_v42  ;;  %v924_v31 = vadd.f32 %v2768_v53, %v856_v46  ;;  %v1028_v0 = vmul.f32 %v2210_v14, %v2754_v49 }
  0x82   : > { %v1143_v7 = vadd.f32 %v1111_v34, %v1075_v43  ;;  %v2910_v60 = vadd.f32 %v843_v9, %v807_v55  ;;  %v2912_v36 = vadd.f32 %v760_v45, %v692_v27  ;;  %v506_v6 = vsel %vm492_vm1, %v469_v22, %v487_v33  ;;  %v3508_v34 = vld [vmem:[#allocation11_spill] sm:$0xff] }
  0x83   : > { %v633_v38 = vsel %vm601_vm2, %v596_v3, %v578_v1  ;;  %v992_v58 = vadd.f32 %v960_v25, %v924_v31  ;;  %v1096_v29 = vmul.f32 %v2272_v62, %v498_v42  ;;  %v2924_v49 = vmul.f32 %v2201_v10, %v2900_v52  ;;  %v2933_v1 = vld [vmem:[%s2067_s11 + $0x50] sm:$0xff]  ;;  %v2936_v3 = vld [vmem:[%s2067_s11 + $0x58] sm:$0xff] }
  0x84   : > { %v1211_v19 = vadd.f32 %v1179_v17, %v1143_v7  ;;  %v2920_v32 = vmul.f32 %v2405_v2, %v633_v38  ;;  %v1164_v53 = vmul.f32 %v2275_v51, %v2790_v23  ;;  %v872_v22 = vadd.f32 %v3509_v50, %v3508_v34  ;;  %v2975_v34 = vld [vmem:[%s2067_s11 + $0xd8] sm:$0xff] }
  0x85   : > { %v976_v33 = vmul.f32 %v2207_v13, %v2692_v35  ;;  %v1060_v42 = vadd.f32 %v1028_v0, %v992_v58  ;;  %v1232_v47 = vmul.f32 %v2282_v63, %v2900_v52  ;;  %v708_v55 = vmul.f32 %v2114_v41, %v506_v6 }
  0x86   : > { %v1279_v40 = vadd.f32 %v1247_v24, %v1211_v19  ;;  %v776_v9 = vmul.f32 %v2195_v8, %v2833_v4  ;;  %v2944_v27 = vmul.f32 %v2204_v11, %v506_v6  ;;  %v940_v45 = vadd.f32 %v2806_v5, %v872_v22 }
  0x87   : > { %v1044_v35 = vmul.f32 %v2210_v14, %v2800_v21  ;;  %v1128_v18 = vadd.f32 %v1096_v29, %v1060_v42  ;;  %v2951_v43 = vmul.f32 %v2201_v10, %v2920_v32  ;;  %v462_v17 = vrot.slane %v2933_v1, 7 }
  0x88   : > { %1837 = vmatprep.mubr.f32.mxu1 %v1279_v40  ;;  %v480_v46 = vrot.slane %v2936_v3, 7  ;;  %v1008_v24 = vadd.f32 %v976_v33, %v940_v45  ;;  %v1112_v25 = vmul.f32 %v2272_v62, %v506_v6  ;;  %v571_v5 = vrot.slane %v2933_v1, 1 }
  0x89   : > { %3510 = vst [vmem:[#allocation10_spill] sm:$0xff] %v2951_v43  ;;  %v589_v7 = vrot.slane %v2936_v3, 1  ;;  %v1196_v21 = vadd.f32 %v1164_v53, %v1128_v18  ;;  %v893_v0 = vmul.f32 %v2204_v11, %v2825_v57  ;;  %v961_v38 = vmul.f32 %v2207_v13, %v2749_v30  ;;  %v2972_v53 = vld [vmem:[%s2067_s11 + $0xd0] sm:$0xff] }
  0x8a   : > { %v517_v31 = vsel %vm492_vm1, %v480_v46, %v462_v17  ;;  %v1076_v19 = vadd.f32 %v1044_v35, %v1008_v24  ;;  %v1180_v58 = vmul.f32 %v2275_v51, %v2833_v4  ;;  %v761_v29 = vmul.f32 %v2195_v8, %v2933_v1 }
  0x8b   : > { %v2967_v6 = vmul.f32 %v2074_v26, %v517_v31  ;;  %v1264_v50 = vadd.f32 %v1232_v47, %v1196_v21  ;;  %v1248_v57 = vmul.f32 %v2282_v63, %v2920_v32  ;;  %v608_v30 = vsel %vm601_vm2, %v571_v5, %v589_v7 }
  0x8c   : > { %v925_v22 = vadd.f32 %v893_v0, %v2751_v28  ;;  %v1144_v33 = vadd.f32 %v1112_v25, %v1076_v19  ;;  %v1165_v45 = vmul.f32 %v2275_v51, %v2933_v1  ;;  %v470_v35 = vrot.slane %v2972_v53, 7 }
  0x8d   : > { %v693_v40 = vmul.f32 %v2114_v41, %v2967_v6  ;;  %v1097_v42 = vmul.f32 %v2272_v62, %v2967_v6  ;;  %1814 = vmatmul.mubr.f32.gmra.mrb[6].mxu0 %v1264_v50  ;;  %v488_v18 = vrot.slane %v2975_v34, 7  ;;  %v579_v24 = vrot.slane %v2972_v53, 1 }
  0x8e   : > { %v993_v47 = vadd.f32 %v961_v38, %v925_v22  ;;  %v1212_v21 = vadd.f32 %v1180_v58, %v1144_v33  ;;  %v829_v25 = vmul.f32 %v2201_v10, %v608_v30  ;;  %v597_v31 = vrot.slane %v2975_v34, 1 }
  0x8f   : > { %v793_v28 = vadd.f32 %v761_v29, %v693_v40  ;;  %v525_v19 = vsel %vm492_vm1, %v488_v18, %v470_v35  ;;  %v909_v38 = vmul.f32 %v2204_v11, %v2861_v16  ;;  %v977_v50 = vmul.f32 %v2207_v13, %v2830_v54 }
  0x90   : > { %v1061_v0 = vadd.f32 %v2874_v61, %v993_v47  ;;  %v3000_v22 = vadd.f32 %v776_v9, %v708_v55  ;;  %v1280_v43 = vadd.f32 %v1248_v57, %v1212_v21  ;;  %v3003_v58 = vmul.f32 %v2074_v26, %v525_v19 }
  0x91   : > { %v777_v29 = vmul.f32 %v2195_v8, %v2972_v53  ;;  %v1233_v61 = vmul.f32 %v2282_v63, %v608_v30  ;;  %v616_v40 = vsel %vm601_vm2, %v579_v24, %v597_v31  ;;  %v941_v16 = vadd.f32 %v909_v38, %v2762_v44 }
  0x92   : > { %v1129_v33 = vadd.f32 %v1097_v42, %v1061_v0  ;;  %1838 = vmatmul.mubr.f32.gmra.mrb[6].mxu1 %v1280_v43  ;;  %v3011_v47 = vadd.f32 %v829_v25, %v793_v28  ;;  %v3014_v54 = vmul.f32 %v2210_v14, %v608_v30  ;;  %v709_v55 = vmul.f32 %v2114_v41, %v3003_v58 }
  0x93   : > { %v1113_v9 = vmul.f32 %v2272_v62, %v3003_v58  ;;  %v1009_v42 = vadd.f32 %v977_v50, %v941_v16  ;;  %v499_v21 = vsel %vm492_vm1, %v462_v17, %v480_v46  ;;  %v626_v44 = vsel %vm601_vm2, %v589_v7, %v571_v5 }
  0x94   : > { %v1197_v57 = vadd.f32 %v1165_v45, %v1129_v33  ;;  %v809_v43 = vadd.f32 %v777_v29, %v709_v55  ;;  %v845_v28 = vmul.f32 %v2201_v10, %v616_v40  ;;  %v694_v30 = vmul.f32 %v2114_v41, %v499_v21 }
  0x95   : > { %v762_v25 = vmul.f32 %v2195_v8, %v2936_v3  ;;  %v1077_v19 = vadd.f32 %v2896_v56, %v1009_v42  ;;  %v1181_v45 = vmul.f32 %v2275_v51, %v2972_v53  ;;  %v858_v17 = vadd.f32 %v2778_v37, %v2771_v39 }
  0x96   : > { %v1265_v0 = vadd.f32 %v1233_v61, %v1197_v57  ;;  %v3034_v46 = vmul.f32 %v2210_v14, %v616_v40  ;;  %v1249_v5 = vmul.f32 %v2282_v63, %v616_v40  ;;  %v3038_v7 = vmul.f32 %v2405_v2, %v626_v44 }
  0x97   : > { %v962_v38 = vmul.f32 %v2207_v13, %v2790_v23  ;;  %v1145_v50 = vadd.f32 %v1113_v9, %v1077_v19  ;;  %v3043_v56 = vmul.f32 %v2204_v11, %v499_v21  ;;  %v926_v39 = vadd.f32 %v2905_v48, %v858_v17 }
  0x98   : > { %1816 = vmatprep.mubr.f32.mxu0 %v1265_v0  ;;  %v1030_v37 = vmul.f32 %v2210_v14, %v2900_v52  ;;  %v3048_v29 = vadd.f32 %v845_v28, %v809_v43  ;;  %v3050_v33 = vadd.f32 %v762_v25, %v694_v30  ;;  %v507_v61 = vsel %vm492_vm1, %v470_v35, %v488_v18 }
  0x99   : > { %v634_v23 = vsel %vm601_vm2, %v597_v31, %v579_v24  ;;  %v1213_v40 = vadd.f32 %v1181_v45, %v1145_v50  ;;  %v994_v16 = vadd.f32 %v962_v38, %v926_v39  ;;  %v1098_v55 = vmul.f32 %v2272_v62, %v499_v21  ;;  %v3071_v24 = vld [vmem:[%s2067_s11 + $0x60] sm:$0xff]  ;;  %v3074_v31 = vld [vmem:[%s2067_s11 + $0x68] sm:$0xff] }
  0x9a   : > { %v3058_v9 = vmul.f32 %v2405_v2, %v634_v23  ;;  %v3062_v52 = vmul.f32 %v2201_v10, %v3038_v7  ;;  %v1166_v48 = vmul.f32 %v2275_v51, %v2936_v3  ;;  %v874_v35 = vadd.f32 %v2858_v59, %v2822_v15 }
  0x9b   : > { %v978_v18 = vmul.f32 %v2207_v13, %v2833_v4  ;;  %v1281_v57 = vadd.f32 %v1249_v5, %v1213_v40  ;;  %v1062_v42 = vadd.f32 %v1030_v37, %v994_v16  ;;  %v1234_v21 = vmul.f32 %v2282_v63, %v3038_v7  ;;  %v3110_v40 = vld [vmem:[%s2067_s11 + $0xe0] sm:$0xff]  ;;  %v3113_v16 = vld [vmem:[%s2067_s11 + $0xe8] sm:$0xff] }
  0x9c   : > { %v710_v44 = vmul.f32 %v2114_v41, %v507_v61  ;;  %v778_v43 = vmul.f32 %v2195_v8, %v2975_v34  ;;  %v3082_v28 = vmul.f32 %v2204_v11, %v507_v61  ;;  %v942_v15 = vadd.f32 %v2944_v27, %v874_v35 }
  0x9d   : > { %v1046_v4 = vmul.f32 %v2210_v14, %v2920_v32  ;;  %1840 = vmatprep.mubr.f32.mxu1 %v1281_v57  ;;  %v1130_v59 = vadd.f32 %v1098_v55, %v1062_v42  ;;  %v3089_v30 = vmul.f32 %v2201_v10, %v3058_v9  ;;  %v463_v25 = vrot.slane %v3071_v24, 7 }
  0x9e   : > { %v481_v0 = vrot.slane %v3074_v31, 7  ;;  %v1010_v19 = vadd.f32 %v978_v18, %v942_v15  ;;  %v1114_v45 = vmul.f32 %v2272_v62, %v507_v61  ;;  %v572_v27 = vrot.slane %v3071_v24, 1 }
  0x9f   : > { %3511 = vst [vmem:[#allocation11_spill] sm:$0xff] %v3089_v30  ;;  %v590_v17 = vrot.slane %v3074_v31, 1  ;;  %v1198_v32 = vadd.f32 %v1166_v48, %v1130_v59  ;;  %v895_v38 = vmul.f32 %v2204_v11, %v2967_v6  ;;  %v963_v50 = vmul.f32 %v2207_v13, %v2933_v1 }
  0xa0   : > { %v518_v5 = vsel %vm492_vm1, %v481_v0, %v463_v25  ;;  %v3102_v39 = vadd.f32 %v778_v43, %v710_v44  ;;  %v1078_v37 = vadd.f32 %v1046_v4, %v1010_v19  ;;  %v1182_v61 = vmul.f32 %v2275_v51, %v2975_v34 }
  0xa1   : > { %v3107_v23 = vmul.f32 %v2074_v26, %v518_v5  ;;  %v1266_v55 = vadd.f32 %v1234_v21, %v1198_v32  ;;  %v1250_v6 = vmul.f32 %v2282_v63, %v3058_v9  ;;  %v609_v1 = vsel %vm601_vm2, %v572_v27, %v590_v17 }
  0xa2   : > { %3512 = vst [vmem:[#allocation12_spill] sm:$0xff] %v3102_v39  ;;  %v927_v48 = vadd.f32 %v895_v38, %v2871_v20  ;;  %v1146_v35 = vadd.f32 %v1114_v45, %v1078_v37  ;;  %v763_v18 = vmul.f32 %v2195_v8, %v3071_v24  ;;  %v1167_v42 = vmul.f32 %v2275_v51, %v3071_v24 }
  0xa3   : > { %v1099_v57 = vmul.f32 %v2272_v62, %v3107_v23  ;;  %1817 = vmatmul.mubr.f32.gmra.mrb[8].mxu0 %v1266_v55  ;;  %v471_v44 = vrot.slane %v3110_v40, 7  ;;  %v489_v43 = vrot.slane %v3113_v16, 7  ;;  %v580_v15 = vrot.slane %v3110_v40, 1 }
  0xa4   : > { %v995_v21 = vadd.f32 %v963_v50, %v927_v48  ;;  %v1214_v4 = vadd.f32 %v1182_v61, %v1146_v35  ;;  %v695_v20 = vmul.f32 %v2114_v41, %v3107_v23  ;;  %v831_v59 = vmul.f32 %v2201_v10, %v609_v1 }
  0xa5   : > { %v598_v19 = vrot.slane %v3113_v16, 1  ;;  %v526_v32 = vsel %vm492_vm1, %v489_v43, %v471_v44  ;;  %v911_v5 = vmul.f32 %v2204_v11, %v3003_v58  ;;  %v979_v38 = vmul.f32 %v2207_v13, %v2972_v53 }
  0xa6   : > { %v1063_v45 = vadd.f32 %v3014_v54, %v995_v21  ;;  %v1282_v50 = vadd.f32 %v1250_v6, %v1214_v4  ;;  %v3141_v37 = vmul.f32 %v2074_v26, %v526_v32  ;;  %v779_v55 = vmul.f32 %v2195_v8, %v3110_v40 }
  0xa7   : > { %v617_v61 = vsel %vm601_vm2, %v580_v15, %v598_v19  ;;  %v3148_v54 = vmul.f32 %v2210_v14, %v609_v1  ;;  %v1235_v35 = vmul.f32 %v2282_v63, %v609_v1  ;;  %v943_v58 = vadd.f32 %v911_v5, %v2910_v60 }
  0xa8   : > { %v1131_v48 = vadd.f32 %v1099_v57, %v1063_v45  ;;  %1841 = vmatmul.mubr.f32.gmra.mrb[8].mxu1 %v1282_v50  ;;  %v795_v53 = vadd.f32 %v763_v18, %v695_v20  ;;  %v711_v6 = vmul.f32 %v2114_v41, %v3141_v37  ;;  %v847_v21 = vmul.f32 %v2201_v10, %v617_v61 }
  0xa9   : > { %v1115_v4 = vmul.f32 %v2272_v62, %v3141_v37  ;;  %v1011_v30 = vadd.f32 %v979_v38, %v943_v58  ;;  %v500_v39 = vsel %vm492_vm1, %v463_v25, %v481_v0  ;;  %v627_v1 = vsel %vm601_vm2, %v590_v17, %v572_v27 }
  0xaa   : > { %v1199_v32 = vadd.f32 %v1167_v42, %v1131_v48  ;;  %v811_v57 = vadd.f32 %v779_v55, %v711_v6  ;;  %v1183_v60 = vmul.f32 %v2275_v51, %v3110_v40  ;;  %v696_v18 = vmul.f32 %v2114_v41, %v500_v39 }
  0xab   : > { %v764_v20 = vmul.f32 %v2195_v8, %v3074_v31  ;;  %v1079_v5 = vadd.f32 %v3034_v46, %v1011_v30  ;;  %v3168_v42 = vmul.f32 %v2405_v2, %v627_v1  ;;  %v860_v25 = vadd.f32 %v2924_v49, %v2912_v36  ;;  %v3220_v1 = vld [vmem:[%s2067_s11 + $0xf0] sm:$0xff] }
  0xac   : > { %v1267_v45 = vadd.f32 %v1235_v35, %v1199_v32  ;;  %v3172_v0 = vadd.f32 %v831_v59, %v795_v53  ;;  %v3175_v27 = vmul.f32 %v2210_v14, %v617_v61  ;;  %v1251_v17 = vmul.f32 %v2282_v63, %v617_v61 }
  0xad   : > { %v964_v38 = vmul.f32 %v2207_v13, %v2936_v3  ;;  %v1147_v50 = vadd.f32 %v1115_v4, %v1079_v5  ;;  %v3181_v46 = vmul.f32 %v2204_v11, %v500_v39  ;;  %v928_v30 = vadd.f32 %v3043_v56, %v860_v25 }
  0xae   : > { %1819 = vmatprep.mubr.f32.mxu0 %v1267_v45  ;;  %v1032_v36 = vmul.f32 %v2210_v14, %v3038_v7  ;;  %v3186_v49 = vadd.f32 %v847_v21, %v811_v57  ;;  %v3188_v59 = vadd.f32 %v764_v20, %v696_v18  ;;  %v508_v61 = vsel %vm492_vm1, %v471_v44, %v489_v43  ;;  %v3513_v44 = vld [vmem:[#allocation10_spill] sm:$0xff] }
  0xaf   : > { %v635_v3 = vsel %vm601_vm2, %v598_v19, %v580_v15  ;;  %v1215_v55 = vadd.f32 %v1183_v60, %v1147_v50  ;;  %v3196_v48 = vmul.f32 %v2201_v10, %v3168_v42  ;;  %v996_v56 = vadd.f32 %v964_v38, %v928_v30  ;;  %v3514_v20 = vld [vmem:[#allocation2_spill] sm:$0xff] }
  0xb0   : > { %v1100_v7 = vmul.f32 %v2272_v62, %v500_v39  ;;  %v1168_v35 = vmul.f32 %v2275_v51, %v3074_v31  ;;  %v1236_v58 = vmul.f32 %v2282_v63, %v3168_v42  ;;  %v876_v43 = vadd.f32 %v3513_v44, %v3000_v22 }
  0xb1   : > { %v980_v15 = vmul.f32 %v2207_v13, %v2975_v34  ;;  %v1283_v19 = vadd.f32 %v1251_v17, %v1215_v55  ;;  %v1064_v53 = vadd.f32 %v1032_v36, %v996_v56  ;;  %v3208_v6 = vmul.f32 %v2405_v2, %v635_v3  ;;  %v3223_v34 = vld [vmem:[%s2067_s11 + $0xf8] sm:$0xff] }
  0xb2   : > { %v712_v21 = vmul.f32 %v2114_v41, %v508_v61  ;;  %v780_v39 = vmul.f32 %v2195_v8, %v3113_v16  ;;  %v3214_v4 = vmul.f32 %v2204_v11, %v508_v61  ;;  %v944_v32 = vadd.f32 %v3082_v28, %v876_v43  ;;  %v1925_v43 = vld [vmem:[%s2067_s11 + $0x70] sm:$0xff] }
  0xb3   : > { %v1048_v22 = vmul.f32 %v2210_v14, %v3058_v9  ;;  %1843 = vmatprep.mubr.f32.mxu1 %v1283_v19  ;;  %v1132_v57 = vadd.f32 %v1100_v7, %v1064_v53  ;;  %v1116_v60 = vmul.f32 %v2272_v62, %v508_v61  ;;  %v897_v41 = vmul.f32 %v2204_v11, %v3107_v23  ;;  %v3515_v19 = vld [vmem:[#allocation4_spill] sm:$0xff] }
  0xb4   : > { %v965_v8 = vmul.f32 %v2207_v13, %v3071_v24  ;;  %v1012_v18 = vadd.f32 %v980_v15, %v944_v32  ;;  %v1184_v28 = vmul.f32 %v2275_v51, %v3113_v16  ;;  %v1252_v9 = vmul.f32 %v2282_v63, %v3208_v6 }
  0xb5   : > { %v1101_v45 = vmul.f32 %v2272_v62, %v3514_v20  ;;  %v1200_v5 = vadd.f32 %v1168_v35, %v1132_v57  ;;  %v929_v25 = vadd.f32 %v897_v41, %v3011_v47  ;;  %v472_v17 = vrot.slane %v3220_v1, 7 }
  0xb6   : > { %v490_v23 = vrot.slane %v3223_v34, 7  ;;  %v1080_v38 = vadd.f32 %v1048_v22, %v1012_v18  ;;  %v581_v24 = vrot.slane %v3220_v1, 1  ;;  %v599_v50 = vrot.slane %v3223_v34, 1 }
  0xb7   : > { %v913_v30 = vmul.f32 %v2204_v11, %v3141_v37  ;;  %v1268_v36 = vadd.f32 %v1236_v58, %v1200_v5  ;;  %v997_v61 = vadd.f32 %v965_v8, %v929_v25  ;;  %v981_v47 = vmul.f32 %v2207_v13, %v3110_v40  ;;  %v3518_v5 = vld [vmem:[#allocation11_spill] sm:$0xff] }
  0xb8   : > { %v527_v3 = vsel %vm492_vm1, %v490_v23, %v472_v17  ;;  %v1148_v55 = vadd.f32 %v1116_v60, %v1080_v38  ;;  %v618_v7 = vsel %vm601_vm2, %v581_v24, %v599_v50  ;;  %v3251_v44 = vadd.f32 %v780_v39, %v712_v21 }
  0xb9   : > { %v561_v56 = vmul.f32 %v2074_v26, %v527_v3  ;;  %v945_v35 = vadd.f32 %v913_v30, %v3048_v29  ;;  %1820 = vmatmul.mubr.f32.gmra.mrb[10].mxu0 %v1268_v36  ;;  %v3255_v37 = vmul.f32 %v2201_v10, %v3208_v6  ;;  %v1065_v58 = vadd.f32 %v3148_v54, %v997_v61  ;;  %v1926_v30 = vld [vmem:[%s2067_s11 + $0x78] sm:$0xff] }
  0xba   : > { %v1169_v40 = vmul.f32 %v1925_v43, %v2275_v51  ;;  %v1216_v15 = vadd.f32 %v1184_v28, %v1148_v55  ;;  %v1237_v53 = vmul.f32 %v2282_v63, %v3515_v19  ;;  %v3264_v21 = vmul.f32 %v2210_v14, %v618_v7  ;;  %v3519_v55 = vld [vmem:[#allocation7_spill] sm:$0xff] }
  0xbb   : > { %v1013_v32 = vadd.f32 %v981_v47, %v945_v35  ;;  %v1117_v22 = vmul.f32 %v2272_v62, %v561_v56  ;;  %v1133_v29 = vadd.f32 %v1101_v45, %v1065_v58  ;;  %v862_v10 = vadd.f32 %v3062_v52, %v3050_v33  ;;  %v3517_v45 = vld [vmem:[#allocation12_spill] sm:$0xff]  ;;  %v436_v58 = vld [vmem:[%s377_s27] sm:$0xff] }
  0xbc   : > { %v966_v54 = vmul.f32 %v2207_v13, %v3074_v31  ;;  %v1284_v39 = vadd.f32 %v1252_v9, %v1216_v15  ;;  %v1185_v60 = vmul.f32 %v2275_v51, %v3220_v1  ;;  %v1253_v41 = vmul.f32 %v2282_v63, %v618_v7  ;;  %v3516_v31 = vld [vmem:[#allocation6_spill] sm:$0xff] }
  0xbd   : > { %v1081_v57 = vadd.f32 %v3175_v27, %v1013_v32  ;;  %v1201_v8 = vadd.f32 %v1169_v40, %v1133_v29  ;;  %v915_v18 = vmul.f32 %v2204_v11, %v561_v56  ;;  %v930_v28 = vadd.f32 %v3181_v46, %v862_v10  ;;  %v3520_v10 = vld [vmem:[#allocation3_spill] sm:$0xff] }
  0xbe   : > { %v1034_v33 = vmul.f32 %v2210_v14, %v3168_v42  ;;  %1844 = vmatmul.mubr.f32.gmra.mrb[10].mxu1 %v1284_v39  ;;  %v1102_v9 = vmul.f32 %v2272_v62, %v3516_v31  ;;  %v636_v27 = vsel %vm601_vm2, %v599_v50, %v581_v24  ;;  %v878_v25 = vadd.f32 %v3518_v5, %v3517_v45  ;;  %v1927_v5 = vld [vmem:[%s2067_s11 + $0x80] sm:$0xff] }
  0xbf   : > { %v1149_v52 = vadd.f32 %v1117_v22, %v1081_v57  ;;  %v1269_v38 = vadd.f32 %v1237_v53, %v1201_v8  ;;  %v998_v46 = vadd.f32 %v966_v54, %v930_v28  ;;  %v1170_v42 = vmul.f32 %v1926_v30, %v2275_v51 }
  0xc0   : > { %v982_v36 = vmul.f32 %v2207_v13, %v3113_v16  ;;  %v509_v3 = vsel %vm492_vm1, %v472_v17, %v490_v23  ;;  %v946_v24 = vadd.f32 %v3214_v4, %v878_v25  ;;  %v1050_v50 = vmul.f32 %v2210_v14, %v3208_v6  ;;  %v437_v23 = vld [vmem:[%s377_s27 + $0x8] sm:$0xff] }
  0xc1   : > { %v1217_v61 = vadd.f32 %v1185_v60, %v1149_v52  ;;  %1822 = vmatprep.mubr.f32.mxu0 %v1269_v38  ;;  %v1066_v47 = vadd.f32 %v1034_v33, %v998_v46  ;;  %v1238_v56 = vmul.f32 %v2282_v63, %v3519_v55  ;;  %v671_v7 = vmul.f32 %v2405_v2, %v636_v27 }
  0xc2   : > { %v1118_v35 = vmul.f32 %v2272_v62, %v509_v3  ;;  %v1014_v40 = vadd.f32 %v982_v36, %v946_v24  ;;  %v899_v17 = vmul.f32 %v2204_v11, %v3514_v20  ;;  %v967_v4 = vmul.f32 %v1925_v43, %v2207_v13 }
  0xc3   : > { %v1285_v16 = vadd.f32 %v1253_v41, %v1217_v61  ;;  %v1134_v15 = vadd.f32 %v1102_v9, %v1066_v47  ;;  %v1186_v6 = vmul.f32 %v2275_v51, %v3223_v34  ;;  %v1254_v53 = vmul.f32 %v2282_v63, %v671_v7 }
  0xc4   : > { %v1035_v32 = vmul.f32 %v2210_v14, %v3515_v19  ;;  %v1082_v22 = vadd.f32 %v1050_v50, %v1014_v40  ;;  %v931_v29 = vadd.f32 %v899_v17, %v3172_v0  ;;  %v1103_v54 = vmul.f32 %v2272_v62, %v3520_v10  ;;  %v3522_v40 = vld [vmem:[#allocation8_spill] sm:$0xff] }
  0xc5   : > { %1846 = vmatprep.mubr.f32.mxu1 %v1285_v16  ;;  %v439_v20 = vmul.f32 0.0, %v436_v58  ;;  %v1202_v43 = vadd.f32 %v1170_v42, %v1134_v15  ;;  %v440_v39 = vmul.f32 0.0, %v437_v23  ;;  %v947_v57 = vadd.f32 %v915_v18, %v3186_v49  ;;  %v3521_v49 = vld [vmem:[#allocation5_spill] sm:$0xff] }
  0xc6   : > { %v983_v60 = vmul.f32 %v2207_v13, %v3220_v1  ;;  %v1150_v41 = vadd.f32 %v1118_v35, %v1082_v22  ;;  %v999_v8 = vadd.f32 %v967_v4, %v931_v29  ;;  %v1171_v25 = vmul.f32 %v1927_v5, %v2275_v51  ;;  %v3523_v29 = vld [vmem:[#allocation9_spill] sm:$0xff] }
  0xc7   : > { %v473_v28 = vrot.slane %v439_v20, 7  ;;  %v582_v19 = vrot.slane %v439_v20, 1  ;;  %v1270_v33 = vadd.f32 %v1238_v56, %v1202_v43  ;;  %v491_v52 = vrot.slane %v440_v39, 7 }
  0xc8   : > { %v600_v9 = vrot.slane %v440_v39, 1  ;;  %v1015_v0 = vadd.f32 %v983_v60, %v947_v57  ;;  %v1218_v27 = vadd.f32 %v1186_v6, %v1150_v41  ;;  %v1067_v45 = vadd.f32 %v1035_v32, %v999_v8  ;;  %v1928_v6 = vld [vmem:[%s2067_s11 + $0x88] sm:$0xff] }
  0xc9   : > { %v864_v38 = vadd.f32 %v3196_v48, %v3188_v59  ;;  %1823 = vmatmul.mubr.f32.gmra.mrb[12].mxu0 %v1270_v33  ;;  %v1239_v1 = vmul.f32 %v2282_v63, %v3521_v49  ;;  %v528_v18 = vsel %vm492_vm1, %v491_v52, %v473_v28  ;;  %v900_v42 = vmul.f32 %v2204_v11, %v3516_v31 }
  0xca   : > { %v619_v46 = vsel %vm601_vm2, %v582_v19, %v600_v9  ;;  %v1286_v36 = vadd.f32 %v1254_v53, %v1218_v27  ;;  %v1135_v61 = vadd.f32 %v1103_v54, %v1067_v45  ;;  %v563_v24 = vmul.f32 %v2074_v26, %v528_v18 }
  0xcb   : > { %v1083_v50 = vadd.f32 %v3264_v21, %v1015_v0  ;;  %v916_v59 = vmul.f32 %v2204_v11, %v509_v3  ;;  %v932_v48 = vadd.f32 %v900_v42, %v864_v38  ;;  %v968_v47 = vmul.f32 %v1926_v30, %v2207_v13 }
  0xcc   : > { %v1036_v56 = vmul.f32 %v2210_v14, %v3519_v55  ;;  %1847 = vmatmul.mubr.f32.gmra.mrb[12].mxu1 %v1286_v36  ;;  %v1203_v35 = vadd.f32 %v1171_v25, %v1135_v61  ;;  %v1119_v58 = vmul.f32 %v2272_v62, %v563_v24  ;;  %v1187_v31 = vmul.f32 %v2275_v51, %v439_v20 }
  0xcd   : > { %v1255_v16 = vmul.f32 %v2282_v63, %v619_v46  ;;  %v1000_v26 = vadd.f32 %v968_v47, %v932_v48  ;;  %v1104_v21 = vmul.f32 %v2272_v62, %v3522_v40  ;;  %v510_v11 = vsel %vm492_vm1, %v473_v28, %v491_v52 }
  0xce   : > { %v880_v30 = vadd.f32 %v3255_v37, %v3251_v44  ;;  %v1271_v3 = vadd.f32 %v1239_v1, %v1203_v35  ;;  %v1151_v55 = vadd.f32 %v1119_v58, %v1083_v50  ;;  %v637_v17 = vsel %vm601_vm2, %v600_v9, %v582_v19 }
  0xcf   : > { %v984_v4 = vmul.f32 %v2207_v13, %v3223_v34  ;;  %v1052_v23 = vmul.f32 %v2210_v14, %v671_v7  ;;  %v1068_v15 = vadd.f32 %v1036_v56, %v1000_v26  ;;  %v1172_v53 = vmul.f32 %v1928_v6, %v2275_v51 }
  0xd0   : > { %v948_v32 = vadd.f32 %v916_v59, %v880_v30  ;;  %1825 = vmatprep.mubr.f32.mxu0 %v1271_v3  ;;  %v1219_v22 = vadd.f32 %v1187_v31, %v1151_v55  ;;  %v1240_v44 = vmul.f32 %v2282_v63, %v3523_v29  ;;  %v673_v12 = vmul.f32 %v2405_v2, %v637_v17 }
  0xd1   : > { %v1136_v37 = vadd.f32 %v1104_v21, %v1068_v15  ;;  %v1120_v54 = vmul.f32 %v2272_v62, %v510_v11  ;;  %v1188_v7 = vmul.f32 %v2275_v51, %v440_v39 }
  0xd2   : > { %v1016_v10 = vadd.f32 %v984_v4, %v948_v32  ;;  %v1287_v13 = vadd.f32 %v1255_v16, %v1219_v22  ;;  %v1256_v57 = vmul.f32 %v2282_v63, %v673_v12 }
  0xd3   : > { %v1204_v34 = vadd.f32 %v1172_v53, %v1136_v37 }
  0xd4   : > { %v1084_v14 = vadd.f32 %v1052_v23, %v1016_v10  ;;  %1849 = vmatprep.mubr.f32.mxu1 %v1287_v13 }
  0xd5   : > { %v1272_v20 = vadd.f32 %v1240_v44, %v1204_v34 }
  0xd6   : > { %v1152_v43 = vadd.f32 %v1120_v54, %v1084_v14 }
  0xd7   : > { %1826 = vmatmul.mubr.f32.gmra.mrb[14].mxu0 %v1272_v20 }
  0xd8   : > { %v1220_v60 = vadd.f32 %v1188_v7, %v1152_v43 }
  0xda   : > { %v1288_v41 = vadd.f32 %v1256_v57, %v1220_v60 }
  0xdc   : > { %1850 = vmatmul.mubr.f32.gmra.mrb[14].mxu1 %v1288_v41 }
 0x121   : > { %v1806_v51 = vpop.f32.mrb[0].mxu0 }
 0x122   : > { %1532 = vst.msk [vmem:[%s3359_s30 + $0x8] sm:$0xff] %vm1530_vm4, %v1806_v51  ;;  %v1371_v62 = vpop.f32.mrb[1].mxu0 }
 0x123   : > { %1531 = vst.msk [vmem:[%s3359_s30] sm:$0xff] %vm1530_vm4, %v1371_v62 }
 0x12a   : > { %v1830_v63 = vpop.f32.mrb[0].mxu1 }
 0x12b   : > { %1548 = vst.msk [vmem:[%s3359_s30 + $0x88] sm:$0xff] %vm1530_vm4, %v1830_v63  ;;  %v1451_v2 = vpop.f32.mrb[1].mxu1 }
 0x12c   : > { %1547 = vst.msk [vmem:[%s3359_s30 + $0x80] sm:$0xff] %vm1530_vm4, %v1451_v2 }
 0x138   : > { %v1809_v39 = vpop.f32.mrb[2].mxu0 }
 0x139   : > { %1534 = vst.msk [vmem:[%s3359_s30 + $0x18] sm:$0xff] %vm1530_vm4, %v1809_v39  ;;  %v1381_v8 = vpop.f32.mrb[3].mxu0 }
 0x13a   : > { %1533 = vst.msk [vmem:[%s3359_s30 + $0x10] sm:$0xff] %vm1530_vm4, %v1381_v8 }
 0x13d   : > { %v1833_v28 = vpop.f32.mrb[2].mxu1 }
 0x13e   : > { %1550 = vst.msk [vmem:[%s3359_s30 + $0x98] sm:$0xff] %vm1530_vm4, %v1833_v28  ;;  %v1461_v19 = vpop.f32.mrb[3].mxu1 }
 0x13f   : > { %1549 = vst.msk [vmem:[%s3359_s30 + $0x90] sm:$0xff] %vm1530_vm4, %v1461_v19 }
 0x14b   : > { %v1812_v33 = vpop.f32.mrb[4].mxu0 }
 0x14c   : > { %1536 = vst.msk [vmem:[%s3359_s30 + $0x28] sm:$0xff] %vm1530_vm4, %v1812_v33  ;;  %v1391_v52 = vpop.f32.mrb[5].mxu0 }
 0x14d   : > { %1535 = vst.msk [vmem:[%s3359_s30 + $0x20] sm:$0xff] %vm1530_vm4, %v1391_v52 }
 0x14f   : > { %v1836_v9 = vpop.f32.mrb[4].mxu1 }
 0x150   : > { %1552 = vst.msk [vmem:[%s3359_s30 + $0xa8] sm:$0xff] %vm1530_vm4, %v1836_v9  ;;  %v1471_v0 = vpop.f32.mrb[5].mxu1 }
 0x151   : > { %1551 = vst.msk [vmem:[%s3359_s30 + $0xa0] sm:$0xff] %vm1530_vm4, %v1471_v0 }
 0x160   : > { %v1815_v27 = vpop.f32.mrb[6].mxu0 }
 0x161   : > { %1538 = vst.msk [vmem:[%s3359_s30 + $0x38] sm:$0xff] %vm1530_vm4, %v1815_v27  ;;  %v1401_v45 = vpop.f32.mrb[7].mxu0 }
 0x162   : > { %1537 = vst.msk [vmem:[%s3359_s30 + $0x30] sm:$0xff] %vm1530_vm4, %v1401_v45 }
 0x165   : > { %v1839_v5 = vpop.f32.mrb[6].mxu1 }
 0x166   : > { %1554 = vst.msk [vmem:[%s3359_s30 + $0xb8] sm:$0xff] %vm1530_vm4, %v1839_v5  ;;  %v1481_v25 = vpop.f32.mrb[7].mxu1 }
 0x167   : > { %1553 = vst.msk [vmem:[%s3359_s30 + $0xb0] sm:$0xff] %vm1530_vm4, %v1481_v25 }
 0x176   : > { %v1818_v38 = vpop.f32.mrb[8].mxu0 }
 0x177   : > { %1540 = vst.msk [vmem:[%s3359_s30 + $0x48] sm:$0xff] %vm1530_vm4, %v1818_v38  ;;  %v1411_v49 = vpop.f32.mrb[9].mxu0 }
 0x178   : > { %1539 = vst.msk [vmem:[%s3359_s30 + $0x40] sm:$0xff] %vm1530_vm4, %v1411_v49 }
 0x17b   : > { %v1842_v1 = vpop.f32.mrb[8].mxu1 }
 0x17c   : > { %1556 = vst.msk [vmem:[%s3359_s30 + $0xc8] sm:$0xff] %vm1530_vm4, %v1842_v1  ;;  %v1491_v18 = vpop.f32.mrb[9].mxu1 }
 0x17d   : > { %1555 = vst.msk [vmem:[%s3359_s30 + $0xc0] sm:$0xff] %vm1530_vm4, %v1491_v18 }
 0x18c   : > { %v1821_v46 = vpop.f32.mrb[10].mxu0 }
 0x18d   : > { %1542 = vst.msk [vmem:[%s3359_s30 + $0x58] sm:$0xff] %vm1530_vm4, %v1821_v46  ;;  %v1421_v42 = vpop.f32.mrb[11].mxu0 }
 0x18e   : > { %1541 = vst.msk [vmem:[%s3359_s30 + $0x50] sm:$0xff] %vm1530_vm4, %v1421_v42 }
 0x191   : > { %v1845_v36 = vpop.f32.mrb[10].mxu1 }
 0x192   : > { %1558 = vst.msk [vmem:[%s3359_s30 + $0xd8] sm:$0xff] %vm1530_vm4, %v1845_v36  ;;  %v1501_v61 = vpop.f32.mrb[11].mxu1 }
 0x193   : > { %1557 = vst.msk [vmem:[%s3359_s30 + $0xd0] sm:$0xff] %vm1530_vm4, %v1501_v61 }
 0x19c   : > { %v1824_v24 = vpop.f32.mrb[12].mxu0 }
 0x19d   : > { %1544 = vst.msk [vmem:[%s3359_s30 + $0x68] sm:$0xff] %vm1530_vm4, %v1824_v24  ;;  %v1431_v50 = vpop.f32.mrb[13].mxu0 }
 0x19e   : > { %1543 = vst.msk [vmem:[%s3359_s30 + $0x60] sm:$0xff] %vm1530_vm4, %v1431_v50 }
 0x19f   : > { %v1848_v59 = vpop.f32.mrb[12].mxu1 }
 0x1a0   : > { %1560 = vst.msk [vmem:[%s3359_s30 + $0xe8] sm:$0xff] %vm1530_vm4, %v1848_v59  ;;  %v1511_v48 = vpop.f32.mrb[13].mxu1 }
 0x1a1   : > { %1559 = vst.msk [vmem:[%s3359_s30 + $0xe0] sm:$0xff] %vm1530_vm4, %v1511_v48 }
 0x1aa   : > { %v1827_v47 = vpop.f32.mrb[14].mxu0 }
 0x1ab   : > { %1546 = vst.msk [vmem:[%s3359_s30 + $0x78] sm:$0xff] %vm1530_vm4, %v1827_v47  ;;  %v1441_v56 = vpop.f32.mrb[15].mxu0 }
 0x1ac   : > { %1545 = vst.msk [vmem:[%s3359_s30 + $0x70] sm:$0xff] %vm1530_vm4, %v1441_v56 }
 0x1af   : > { %v1851_v35 = vpop.f32.mrb[14].mxu1 }
 0x1b0   : > { %1562 = vst.msk [vmem:[%s3359_s30 + $0xf8] sm:$0xff] %vm1530_vm4, %v1851_v35  ;;  %v1521_v58 = vpop.f32.mrb[15].mxu1 }
 0x1b1   : > { %1561 = vst.msk [vmem:[%s3359_s30 + $0xf0] sm:$0xff] %vm1530_vm4, %v1521_v58 }
 0x1b2 PF: > { %s15_s20 = sadd.s32 1, %s1951_s20   ;;  %s3524_s18 = smov %s1947_s19 }
 0x1b3   : > { %p12_p5 = scmp.ge.s32.totalorder %s15_s20, 4   ;;  %s3525_s19 = smov %s3527_s21 }
 0x1b5   :  { %14 = sbr.rel (!%p12_p5) target bundleno = 2 (0x2), region = 76 }

</bundles_post_ra>
